<compile_context>
chip_gen: v7x
topology: tpu7x:2x2x1
jax: 0.10.0
libtpu: 0.0.40
codegen_flags: <defaults>
</compile_context>

<pallas_src>
import functools
import math

import jax
import jax.numpy as jnp
import numpy as np
from jax.experimental import pallas as pl
from jax.experimental.pallas import tpu as pltpu


_LOG_EPS = math.log(1e-6)            # masked tap bias   == torch.log(0 + 1e-6)
_LOG_ONE_P_EPS = math.log(1.0 + 1e-6)  # unmasked tap bias == torch.log(1 + 1e-6)


# --------------------------------------------------------------------------
# Fused Pallas kernel: NCL in -> time proj -> all layers -> NCL out
# --------------------------------------------------------------------------
def fused_module_kernel(*refs, num_layers, L, C, Cc, K, B, has_time,
                        compute_dtype):
    if has_time:
        (x_ref, xc_ref, t_ref,
         ln_g_ref, ln_b_ref, conv_w_ref, conv_b_ref,
         qkv_w_ref, qkv_b_ref, qkc_w_ref, ffn_w_ref, ffn_b_ref,
         time_w_ref, time_b_ref, o_ref) = refs
    else:
        (x_ref, xc_ref,
         ln_g_ref, ln_b_ref, conv_w_ref, conv_b_ref,
         qkv_w_ref, qkv_b_ref, qkc_w_ref, ffn_w_ref, ffn_b_ref, o_ref) = refs

    eps = 1e-5
    BL = B * L
    f32 = jnp.float32
    cdt = compute_dtype
    inv_sqrt_d = 1.0 / math.sqrt(C)

    x_ncl = x_ref[...].astype(f32)      # (B, C, L)
    xc_ncl = xc_ref[...].astype(f32)    # (B, Cc, L)

    if has_time:
        t3 = t_ref[...].astype(f32)                  # (B, 1, T)
        st3 = t3 * jax.nn.sigmoid(t3)                # swish (f32)

    # ---- fold the NCL -> rows (B*L, C) layout change into the kernel -------
    # Per-batch 2-D transposes (XLU); B is capped in the wrapper so the unroll
    # stays small.  The time projection is added here so it is never
    # materialized as an (N, L, C) HBM tensor.
    x_pieces, xc_pieces = [], []
    for b in range(B):
        xb = x_ncl[b].T                              # (L, C)
        if has_time:
            tp_b = (jnp.dot(st3[b].astype(cdt), time_w_ref[...],
                            preferred_element_type=f32)
                    + time_b_ref[...])               # (1, C)
            xb = xb + tp_b
        x_pieces.append(xb)
        xc_pieces.append(xc_ncl[b].T)                # (L, Cc)
    x = x_pieces[0] if B == 1 else jnp.concatenate(x_pieces, axis=0)   # (BL, C)
    xc = xc_pieces[0] if B == 1 else jnp.concatenate(xc_pieces, axis=0)
    xc_c = xc.astype(cdt)                            # only a matmul operand

    # Per-row index within its own length-L sequence (for shift masks).
    row_q = jax.lax.broadcasted_iota(jnp.int32, (BL, 1), 0) % L
    lane_k = jax.lax.broadcasted_iota(jnp.int32, (1, K), 1)

    def shift_rows(arr, s, m):
        """Row q of each sequence <- arr[q + s]; zeroed where q+s leaves [0, L)."""
        if s % BL == 0:
            r = arr
        else:
            # jnp.roll semantics: out[r] = in[(r - shift) % BL]; want in[r + s].
            r = pltpu.roll(arr, shift=(-s) % BL, axis=0)
        return r * m

    def layer_norm(v, li, idx):
        g = ln_g_ref[li, idx:idx + 1, :]             # (1, C)
        b = ln_b_ref[li, idx:idx + 1, :]
        mu = jnp.mean(v, axis=-1, keepdims=True)
        var = jnp.mean((v - mu) ** 2, axis=-1, keepdims=True)
        return (v - mu) * jax.lax.rsqrt(var + eps) * g + b

    # TODO(synk): nn.Dropout layers are treated as identity (inference mode).
    for li in range(num_layers):
        dilation = 2 ** li
        padding = (K // 2) * dilation
        offs = [j * dilation - padding for j in range(K)]

        # Tap validity masks: computed once per layer, shared by conv/K/V.
        valid = [jnp.logical_and(row_q + s >= 0, row_q + s < L) for s in offs]
        mask_f = [v.astype(f32) for v in valid]

        xn_conv = layer_norm(x, li, 0)
        xn_att = layer_norm(x, li, 1)

        # ---- dilated conv: ONE wide (BL,C)@(C,K*C) matmul, then roll/mask/sum
        conv_all = jnp.dot(xn_conv.astype(cdt), conv_w_ref[li],
                           preferred_element_type=f32)               # (BL, K*C)
        out1 = jnp.zeros((BL, C), f32)
        for j, s in enumerate(offs):
            out1 = out1 + shift_rows(conv_all[:, j * C:(j + 1) * C], s, mask_f[j])
        out1 = out1 + conv_b_ref[li]

        # ---- local dilated attention with fused QKV projections -------------
        qkv = (jnp.dot(xn_att.astype(cdt), qkv_w_ref[li],
                       preferred_element_type=f32) + qkv_b_ref[li])   # (BL, 3C)
        qkc = jnp.dot(xc_c, qkc_w_ref[li], preferred_element_type=f32)  # (BL, 2C)
        xq = qkv[:, 0:C] + qkc[:, 0:C]
        xk = qkv[:, C:2 * C] + qkc[:, C:2 * C]
        xv = qkv[:, 2 * C:3 * C]

        # Stacked (BL, K) logits: one max/exp/sum chain instead of K.
        att = jnp.zeros((BL, K), f32)
        for j, s in enumerate(offs):
            ks = shift_rows(xk, s, mask_f[j])
            lj = jnp.sum(xq * ks, axis=-1, keepdims=True) * inv_sqrt_d
            lj = lj + jnp.where(valid[j], _LOG_ONE_P_EPS, _LOG_EPS)
            att = att + jnp.where(lane_k == j, lj, 0.0)

        att = att - jnp.max(att, axis=-1, keepdims=True)
        p = jnp.exp(att)
        wgt = p * pl.reciprocal(jnp.sum(p, axis=-1, keepdims=True))    # (BL, K)

        out2 = jnp.zeros((BL, C), f32)
        for j, s in enumerate(offs):
            # vs is zeroed on invalid rows (rolled rows belong to neighboring
            # sequences) - this masking is load-bearing for correctness.
            vs = shift_rows(xv, s, mask_f[j])
            out2 = out2 + wgt[:, j:j + 1] * vs

        # ---- FFN + residual --------------------------------------------------
        cn = layer_norm(out1 + out2, li, 2)
        h = (jnp.dot(cn.astype(cdt), ffn_w_ref[li, 0], preferred_element_type=f32)
             + ffn_b_ref[li, 0:1, :])
        h = 0.5 * h * (1.0 + jax.lax.erf(h * (1.0 / math.sqrt(2.0))))   # exact GELU
        out = (jnp.dot(h.astype(cdt), ffn_w_ref[li, 1], preferred_element_type=f32)
               + ffn_b_ref[li, 1:2, :])
        x = x + out

    # rows -> NCL: write the output directly in PyTorch layout.
    for b in range(B):
        o_ref[b, :, :] = x[b * L:(b + 1) * L, :].T.astype(o_ref.dtype)


# --------------------------------------------------------------------------
# Pallas wrapper
# --------------------------------------------------------------------------
def _rep_spec(a):
    nd = a.ndim
    return pl.BlockSpec(a.shape, lambda n, _nd=nd: (0,) * _nd)


def _pick_batch_block(N, L, max_rows=2048, max_batch=16):
    """Largest divisor B of N such that:
       * B*L <= max_rows  (per-step VMEM / vreg pressure),
       * B   <= max_batch (bounds the unrolled in-kernel 2-D transposes),
       * grid keeps >= 2 steps when N > 1 (both v7x TensorCores get work).
    """
    best = 1
    for b in range(1, N + 1):
        if N % b:
            continue
        if b * L > max_rows or b > max_batch:
            continue
        if N > 1 and N // b < 2:
            continue
        best = b
    return best


def mixed_conv_att_module_v2(x_ncl, x_cross_ncl, time_emb, params, kernel_size,
                             mxu_dtype=jnp.bfloat16):
    """Forward of MixedConvAttModuleV2.  Inputs/outputs use PyTorch NCL layout."""
    N, C, L = x_ncl.shape
    Cc = x_cross_ncl.shape[1]
    lp = params['layers']
    num_layers = len(lp)
    K = kernel_size
    B = _pick_batch_block(N, L)
    has_time = time_emb is not None
    wdt = mxu_dtype

    # Stack per-layer weights; fuse conv taps and Q/K/V along the output dim.
    conv_w = jnp.stack([jnp.concatenate([p['conv_w'][j] for j in range(K)], axis=1)
                        for p in lp]).astype(wdt)                         # (nl, C, K*C)
    qkv_w = jnp.stack([jnp.concatenate([p['qk_w'][0][:C], p['qk_w'][1][:C],
                                        p['v_w']], axis=1)
                       for p in lp]).astype(wdt)                          # (nl, C, 3C)
    qkc_w = jnp.stack([jnp.concatenate([p['qk_w'][0][C:], p['qk_w'][1][C:]], axis=1)
                       for p in lp]).astype(wdt)                          # (nl, Cc, 2C)
    qkv_b = jnp.stack([jnp.concatenate([p['qk_b'][0], p['qk_b'][1],
                                        p['v_b'][0]])[None, :]
                       for p in lp])                                      # (nl, 1, 3C)

    weights = [
        jnp.stack([p['ln_g'] for p in lp]),           # (nl, 3, C)  f32
        jnp.stack([p['ln_b'] for p in lp]),           # (nl, 3, C)  f32
        conv_w,                                       # bf16
        jnp.stack([p['conv_b'] for p in lp]),         # (nl, 1, C)  f32
        qkv_w,                                        # bf16
        qkv_b,                                        # f32
        qkc_w,                                        # bf16
        jnp.stack([p['ffn_w'] for p in lp]).astype(wdt),  # (nl, 2, C, C) bf16
        jnp.stack([p['ffn_b'] for p in lp]),          # (nl, 2, C)  f32
    ]

    inputs = [x_ncl, x_cross_ncl]
    in_specs = [pl.BlockSpec((B, C, L), lambda n: (n, 0, 0)),
                pl.BlockSpec((B, Cc, L), lambda n: (n, 0, 0))]
    if has_time:
        T = time_emb.shape[-1]
        inputs.append(time_emb[:, None, :].astype(jnp.float32))   # (N, 1, T) only
        in_specs.append(pl.BlockSpec((B, 1, T), lambda n: (n, 0, 0)))
        weights = weights + [params['time_w'].astype(wdt), params['time_b']]
    in_specs = in_specs + [_rep_spec(w) for w in weights]

    kern = functools.partial(fused_module_kernel, num_layers=num_layers, L=L,
                             C=C, Cc=Cc, K=K, B=B, has_time=has_time,
                             compute_dtype=wdt)
    out = pl.pallas_call(
        kern,
        out_shape=jax.ShapeDtypeStruct((N, C, L), x_ncl.dtype),
        grid=(N // B,),
        in_specs=in_specs,
        out_specs=pl.BlockSpec((B, C, L), lambda n: (n, 0, 0)),
        compiler_params=pltpu.CompilerParams(
            dimension_semantics=("parallel",),
            vmem_limit_bytes=32 * 1024 * 1024),
    )(*inputs, *weights)
    return out                                        # already NCL


# --------------------------------------------------------------------------
# Deterministic parameter init (shapes match the PyTorch __init__)
# --------------------------------------------------------------------------
def _uniform(key, shape, fan_in):
    bound = 1.0 / math.sqrt(fan_in)
    return jax.random.uniform(key, shape, jnp.float32, -bound, bound)


def init_layer_params(key, C, Cc, K):
    ks = jax.random.split(key, 8)
    return {
        'ln_g': jnp.ones((3, C), jnp.float32),     # norm_conv / norm_att / norm_ffn
        'ln_b': jnp.zeros((3, C), jnp.float32),
        'conv_w': _uniform(ks[0], (K, C, C), C * K),       # tap j: (Cin, Cout)
        'conv_b': _uniform(ks[1], (1, C), C * K),
        'qk_w': _uniform(ks[2], (2, C + Cc, C), C + Cc),   # q, k 1x1 convs
        'qk_b': _uniform(ks[3], (2, C), C + Cc),
        'v_w': _uniform(ks[4], (C, C), C),
        'v_b': _uniform(ks[5], (1, C), C),
        'ffn_w': _uniform(ks[6], (2, C, C), C),            # ffn conv1 / conv2
        'ffn_b': _uniform(ks[7], (2, C), C),
    }


def init_module_params(key, num_layers, C, Cc, K, T):
    keys = jax.random.split(key, num_layers + 2)
    return {
        'layers': [init_layer_params(keys[i], C, Cc, K) for i in range(num_layers)],
        'time_w': _uniform(keys[-2], (T, C), T),   # nn.Linear(T, C), stored transposed
        'time_b': _uniform(keys[-1], (1, C), T),
    }


# --------------------------------------------------------------------------
# Pure-JAX reference (for correctness check)
# --------------------------------------------------------------------------
def _layer_ref(x, xc, p, K, dilation):
    N, L, C = x.shape
    padding = (K // 2) * dilation

    def ln(v, i):
        mu = v.mean(-1, keepdims=True)
        var = ((v - mu) ** 2).mean(-1, keepdims=True)
        return (v - mu) / jnp.sqrt(var + 1e-5) * p['ln_g'][i] + p['ln_b'][i]

    xnc = ln(x, 0)
    xna = ln(x, 1)
    xpad = jnp.pad(xnc, ((0, 0), (padding, padding), (0, 0)))
    out1 = jnp.zeros((N, L, C), jnp.float32)
    for j in range(K):
        out1 = out1 + xpad[:, j * dilation:j * dilation + L, :] @ p['conv_w'][j]
    out1 = out1 + p['conv_b'][0]

    xcat = jnp.concatenate([xna, xc], -1)
    xq = xcat @ p['qk_w'][0] + p['qk_b'][0]
    xk = xcat @ p['qk_w'][1] + p['qk_b'][1]
    xv = xna @ p['v_w'] + p['v_b'][0]
    kpad = jnp.pad(xk, ((0, 0), (padding, padding), (0, 0)))
    vpad = jnp.pad(xv, ((0, 0), (padding, padding), (0, 0)))
    ks = jnp.stack([kpad[:, j * dilation:j * dilation + L, :] for j in range(K)], axis=-1)
    vs = jnp.stack([vpad[:, j * dilation:j * dilation + L, :] for j in range(K)], axis=-1)
    att = jnp.einsum('nlc,nlck->nlk', xq, ks) / math.sqrt(C)
    qi = jnp.arange(L)[:, None]
    ji = jnp.arange(K)[None, :]
    mask = ((qi + ji * dilation) >= padding) & ((qi + ji * dilation) < L + padding)
    att = att + jnp.log(mask.astype(jnp.float32) + 1e-6)
    att = jax.nn.softmax(att, -1) * mask
    out2 = jnp.einsum('nlk,nlck->nlc', att, vs)

    comb = out1 + out2
    cn = ln(comb, 2)
    h = cn @ p['ffn_w'][0] + p['ffn_b'][0]
    h = 0.5 * h * (1.0 + jax.lax.erf(h / math.sqrt(2.0)))
    out = h @ p['ffn_w'][1] + p['ffn_b'][1]
    return x + out


def module_ref(x_ncl, xc_ncl, time_emb, params, K):
    x = jnp.transpose(x_ncl, (0, 2, 1))
    xc = jnp.transpose(xc_ncl, (0, 2, 1))
    if time_emb is not None:
        s = time_emb * jax.nn.sigmoid(time_emb)
        x = x + (s @ params['time_w'] + params['time_b'])[:, None, :]
    for i, lp in enumerate(params['layers']):
        x = _layer_ref(x, xc, lp, K, 2 ** i)
    return jnp.transpose(x, (0, 2, 1))


# --------------------------------------------------------------------------
if __name__ == "__main__":
    # module config: num_layers=2, num_f_maps=32, input_dim_cross=16,
    # kernel_size=3, dropout_rate=0.0, time_emb_dim=8
    num_layers, C, Cc, K, T = 2, 32, 16, 3, 8
    N, L = 2, 16

    key = jax.random.PRNGKey(0)
    k1, k2, k3, k4 = jax.random.split(key, 4)
    x = jax.random.normal(k1, (N, C, L), jnp.float32)        # PyTorch NCL
    x_cross = jax.random.normal(k2, (N, Cc, L), jnp.float32)
    time_emb = jax.random.normal(k3, (N, T), jnp.float32)
    params = init_module_params(k4, num_layers, C, Cc, K, T)

    ref = jax.block_until_ready(module_ref(x, x_cross, time_emb, params, K))

    # bf16 MXU operands (fast path); f32 accumulation / LayerNorm / softmax.
    out_bf16 = jax.block_until_ready(
        mixed_conv_att_module_v2(x, x_cross, time_emb, params, K))
    np.testing.assert_allclose(np.asarray(out_bf16), np.asarray(ref),
                               rtol=3e-2, atol=3e-2)

    # Full-f32 mode: tight structural check of the fused kernel.
    out_f32 = jax.block_until_ready(
        mixed_conv_att_module_v2(x, x_cross, time_emb, params, K,
                                 mxu_dtype=jnp.float32))
    np.testing.assert_allclose(np.asarray(out_f32), np.asarray(ref),
                               rtol=2e-3, atol=2e-3)

    # No time-embedding branch.
    out_nt = jax.block_until_ready(
        mixed_conv_att_module_v2(x, x_cross, None, params, K))
    ref_nt = jax.block_until_ready(module_ref(x, x_cross, None, params, K))
    np.testing.assert_allclose(np.asarray(out_nt), np.asarray(ref_nt),
                               rtol=3e-2, atol=3e-2)

    print("KERNEL_OK")
</pallas_src>

<mosaic_0001>
module attributes {stable_mosaic.version = 11 : i64} {
  func.func @fused_module_kernel(%arg0: i32, %arg1: memref<1x32x16xf32, #tpu.memory_space<vmem>>, %arg2: memref<1x16x16xf32, #tpu.memory_space<vmem>>, %arg3: memref<1x1x8xf32, #tpu.memory_space<vmem>>, %arg4: memref<2x3x32xf32, #tpu.memory_space<vmem>>, %arg5: memref<2x3x32xf32, #tpu.memory_space<vmem>>, %arg6: memref<2x32x96xbf16, #tpu.memory_space<vmem>>, %arg7: memref<2x1x32xf32, #tpu.memory_space<vmem>>, %arg8: memref<2x32x96xbf16, #tpu.memory_space<vmem>>, %arg9: memref<2x1x96xf32, #tpu.memory_space<vmem>>, %arg10: memref<2x16x64xbf16, #tpu.memory_space<vmem>>, %arg11: memref<2x2x32x32xbf16, #tpu.memory_space<vmem>>, %arg12: memref<2x2x32xf32, #tpu.memory_space<vmem>>, %arg13: memref<8x32xbf16, #tpu.memory_space<vmem>>, %arg14: memref<1x32xf32, #tpu.memory_space<vmem>>, %arg15: memref<1x32x16xf32, #tpu.memory_space<vmem>>) attributes {dimension_semantics = [#tpu.dimension_semantics<parallel>], iteration_bounds = array<i64: 2>, scalar_prefetch = 0 : i64, scratch_operands = 0 : i64, tpu.core_type = #tpu.core_type<tc>, window_params = [{transform_indices = @transform_0, window_bounds = array<i64: 1, 32, 16>}, {transform_indices = @transform_1, window_bounds = array<i64: 1, 16, 16>}, {transform_indices = @transform_2, window_bounds = array<i64: 1, 1, 8>}, {pipeline_mode = #tpu.pipeline_mode<synchronous>, transform_indices = @transform_3, window_bounds = array<i64: 2, 3, 32>}, {pipeline_mode = #tpu.pipeline_mode<synchronous>, transform_indices = @transform_4, window_bounds = array<i64: 2, 3, 32>}, {pipeline_mode = #tpu.pipeline_mode<synchronous>, transform_indices = @transform_5, window_bounds = array<i64: 2, 32, 96>}, {pipeline_mode = #tpu.pipeline_mode<synchronous>, transform_indices = @transform_6, window_bounds = array<i64: 2, 1, 32>}, {pipeline_mode = #tpu.pipeline_mode<synchronous>, transform_indices = @transform_7, window_bounds = array<i64: 2, 32, 96>}, {pipeline_mode = #tpu.pipeline_mode<synchronous>, transform_indices = @transform_8, window_bounds = array<i64: 2, 1, 96>}, {pipeline_mode = #tpu.pipeline_mode<synchronous>, transform_indices = @transform_9, window_bounds = array<i64: 2, 16, 64>}, {pipeline_mode = #tpu.pipeline_mode<synchronous>, transform_indices = @transform_10, window_bounds = array<i64: 2, 2, 32, 32>}, {pipeline_mode = #tpu.pipeline_mode<synchronous>, transform_indices = @transform_11, window_bounds = array<i64: 2, 2, 32>}, {pipeline_mode = #tpu.pipeline_mode<synchronous>, transform_indices = @transform_12, window_bounds = array<i64: 8, 32>}, {pipeline_mode = #tpu.pipeline_mode<synchronous>, transform_indices = @transform_13, window_bounds = array<i64: 1, 32>}, {transform_indices = @transform_14, window_bounds = array<i64: 1, 32, 16>}]} {
    %c0 = arith.constant 0 : index
    %c0_0 = arith.constant 0 : index
    %c0_1 = arith.constant 0 : index
    %0 = vector.load %arg1[%c0, %c0_0, %c0_1] : memref<1x32x16xf32, #tpu.memory_space<vmem>>, vector<1x32x16xf32>
    %c0_2 = arith.constant 0 : index
    %c0_3 = arith.constant 0 : index
    %c0_4 = arith.constant 0 : index
    %1 = vector.load %arg2[%c0_2, %c0_3, %c0_4] : memref<1x16x16xf32, #tpu.memory_space<vmem>>, vector<1x16x16xf32>
    %c0_5 = arith.constant 0 : index
    %c0_6 = arith.constant 0 : index
    %c0_7 = arith.constant 0 : index
    %2 = vector.load %arg3[%c0_5, %c0_6, %c0_7] : memref<1x1x8xf32, #tpu.memory_space<vmem>>, vector<1x1x8xf32>
    %3 = arith.negf %2 : vector<1x1x8xf32>
    %4 = math.exp %3 : vector<1x1x8xf32>
    %cst = arith.constant 1.000000e+00 : f32
    %5 = vector.broadcast %cst : f32 to vector<1x1x8xf32>
    %6 = arith.addf %5, %4 : vector<1x1x8xf32>
    %7 = arith.divf %5, %6 : vector<1x1x8xf32>
    %8 = arith.mulf %2, %7 : vector<1x1x8xf32>
    %9 = vector.shape_cast %0 : vector<1x32x16xf32> to vector<32x16xf32>
    %10 = tpu.transpose %9, [1, 0] : vector<32x16xf32> -> vector<16x32xf32>
    %11 = vector.shape_cast %8 : vector<1x1x8xf32> to vector<1x8xf32>
    %12 = arith.truncf %11 : vector<1x8xf32> to vector<1x8xbf16>
    %c0_8 = arith.constant 0 : index
    %c0_9 = arith.constant 0 : index
    %13 = vector.load %arg13[%c0_8, %c0_9] : memref<8x32xbf16, #tpu.memory_space<vmem>>, vector<8x32xbf16>
    %cst_10 = arith.constant dense<0.000000e+00> : vector<1x32xf32>
    %14 = tpu.matmul %12, %13, %cst_10 {dimension_numbers = #tpu.dot_dimension_numbers<[1], [0], [0], [1], [0, 0, 1, 1], [], []>} : vector<1x8xbf16>, vector<8x32xbf16>, vector<1x32xf32> -> vector<1x32xf32>
    %c0_11 = arith.constant 0 : index
    %c0_12 = arith.constant 0 : index
    %15 = vector.load %arg14[%c0_11, %c0_12] : memref<1x32xf32, #tpu.memory_space<vmem>>, vector<1x32xf32>
    %16 = arith.addf %14, %15 : vector<1x32xf32>
    %17 = vector.broadcast %16 : vector<1x32xf32> to vector<16x32xf32>
    %18 = arith.addf %10, %17 : vector<16x32xf32>
    %19 = vector.shape_cast %1 : vector<1x16x16xf32> to vector<16x16xf32>
    %20 = tpu.transpose %19, [1, 0] : vector<16x16xf32> -> vector<16x16xf32>
    %21 = arith.truncf %20 : vector<16x16xf32> to vector<16x16xbf16>
    %22 = tpu.iota {dimensions = array<i32: 0>} : vector<16x1xi32>
    %c16_i32 = arith.constant 16 : i32
    %c0_i32 = arith.constant 0 : i32
    %23 = arith.cmpi eq, %c16_i32, %c0_i32 : i32
    %c1_i32 = arith.constant 1 : i32
    %24 = arith.select %23, %c1_i32, %c16_i32 : i32
    %25 = vector.broadcast %24 : i32 to vector<16x1xi32>
    %26 = arith.remsi %22, %25 : vector<16x1xi32>
    %c0_i32_13 = arith.constant 0 : i32
    %27 = vector.broadcast %c0_i32_13 : i32 to vector<16x1xi32>
    %28 = arith.cmpi ne, %26, %27 : vector<16x1xi32>
    %c0_i32_14 = arith.constant 0 : i32
    %29 = vector.broadcast %c0_i32_14 : i32 to vector<16x1xi32>
    %30 = arith.cmpi slt, %26, %29 : vector<16x1xi32>
    %c0_i32_15 = arith.constant 0 : i32
    %31 = arith.cmpi slt, %24, %c0_i32_15 : i32
    %32 = vector.broadcast %31 : i1 to vector<16x1xi1>
    %33 = vector.broadcast %32 : vector<16x1xi1> to vector<16x1xi1>
    %34 = arith.xori %30, %33 : vector<16x1xi1>
    %35 = arith.andi %34, %28 : vector<16x1xi1>
    %36 = vector.broadcast %24 : i32 to vector<16x1xi32>
    %37 = arith.addi %26, %36 : vector<16x1xi32>
    %38 = arith.select %35, %37, %26 : vector<16x1xi1>, vector<16x1xi32>
    %39 = tpu.iota {dimensions = array<i32: 1>} : vector<1x3xi32>
    %c-1_i32 = arith.constant -1 : i32
    %40 = vector.broadcast %c-1_i32 : i32 to vector<16x1xi32>
    %41 = arith.addi %38, %40 : vector<16x1xi32>
    %c0_i32_16 = arith.constant 0 : i32
    %42 = vector.broadcast %c0_i32_16 : i32 to vector<16x1xi32>
    %43 = arith.cmpi sge, %41, %42 : vector<16x1xi32>
    %c-1_i32_17 = arith.constant -1 : i32
    %44 = vector.broadcast %c-1_i32_17 : i32 to vector<16x1xi32>
    %45 = arith.addi %38, %44 : vector<16x1xi32>
    %c16_i32_18 = arith.constant 16 : i32
    %46 = vector.broadcast %c16_i32_18 : i32 to vector<16x1xi32>
    %47 = arith.cmpi slt, %45, %46 : vector<16x1xi32>
    %48 = arith.andi %43, %47 : vector<16x1xi1>
    %c0_i32_19 = arith.constant 0 : i32
    %49 = vector.broadcast %c0_i32_19 : i32 to vector<16x1xi32>
    %50 = arith.addi %38, %49 : vector<16x1xi32>
    %c0_i32_20 = arith.constant 0 : i32
    %51 = vector.broadcast %c0_i32_20 : i32 to vector<16x1xi32>
    %52 = arith.cmpi sge, %50, %51 : vector<16x1xi32>
    %c0_i32_21 = arith.constant 0 : i32
    %53 = vector.broadcast %c0_i32_21 : i32 to vector<16x1xi32>
    %54 = arith.addi %38, %53 : vector<16x1xi32>
    %c16_i32_22 = arith.constant 16 : i32
    %55 = vector.broadcast %c16_i32_22 : i32 to vector<16x1xi32>
    %56 = arith.cmpi slt, %54, %55 : vector<16x1xi32>
    %57 = arith.andi %52, %56 : vector<16x1xi1>
    %c1_i32_23 = arith.constant 1 : i32
    %58 = vector.broadcast %c1_i32_23 : i32 to vector<16x1xi32>
    %59 = arith.addi %38, %58 : vector<16x1xi32>
    %c0_i32_24 = arith.constant 0 : i32
    %60 = vector.broadcast %c0_i32_24 : i32 to vector<16x1xi32>
    %61 = arith.cmpi sge, %59, %60 : vector<16x1xi32>
    %c1_i32_25 = arith.constant 1 : i32
    %62 = vector.broadcast %c1_i32_25 : i32 to vector<16x1xi32>
    %63 = arith.addi %38, %62 : vector<16x1xi32>
    %c16_i32_26 = arith.constant 16 : i32
    %64 = vector.broadcast %c16_i32_26 : i32 to vector<16x1xi32>
    %65 = arith.cmpi slt, %63, %64 : vector<16x1xi32>
    %66 = arith.andi %61, %65 : vector<16x1xi1>
    %67 = arith.extui %48 : vector<16x1xi1> to vector<16x1xi32>
    %68 = arith.sitofp %67 : vector<16x1xi32> to vector<16x1xf32>
    %69 = arith.extui %57 : vector<16x1xi1> to vector<16x1xi32>
    %70 = arith.sitofp %69 : vector<16x1xi32> to vector<16x1xf32>
    %71 = arith.extui %66 : vector<16x1xi1> to vector<16x1xi32>
    %72 = arith.sitofp %71 : vector<16x1xi32> to vector<16x1xf32>
    %c0_27 = arith.constant 0 : index
    %c0_28 = arith.constant 0 : index
    %c0_29 = arith.constant 0 : index
    %73 = vector.load %arg4[%c0_27, %c0_28, %c0_29] : memref<2x3x32xf32, #tpu.memory_space<vmem>>, vector<1x1x32xf32>
    %74 = vector.shape_cast %73 : vector<1x1x32xf32> to vector<1x32xf32>
    %c0_30 = arith.constant 0 : index
    %c0_31 = arith.constant 0 : index
    %c0_32 = arith.constant 0 : index
    %75 = vector.load %arg5[%c0_30, %c0_31, %c0_32] : memref<2x3x32xf32, #tpu.memory_space<vmem>>, vector<1x1x32xf32>
    %76 = vector.shape_cast %75 : vector<1x1x32xf32> to vector<1x32xf32>
    %cst_33 = arith.constant dense<0.000000e+00> : vector<16xf32>
    %77 = vector.multi_reduction <add>, %18, %cst_33 [1] : vector<16x32xf32> to vector<16xf32>
    %78 = vector.shape_cast %77 : vector<16xf32> to vector<16x1xf32>
    %cst_34 = arith.constant 3.200000e+01 : f32
    %79 = vector.broadcast %cst_34 : f32 to vector<16x1xf32>
    %80 = arith.divf %78, %79 : vector<16x1xf32>
    %81 = vector.broadcast %80 : vector<16x1xf32> to vector<16x32xf32>
    %82 = arith.subf %18, %81 : vector<16x32xf32>
    %83 = arith.mulf %82, %82 : vector<16x32xf32>
    %cst_35 = arith.constant dense<0.000000e+00> : vector<16xf32>
    %84 = vector.multi_reduction <add>, %83, %cst_35 [1] : vector<16x32xf32> to vector<16xf32>
    %85 = vector.shape_cast %84 : vector<16xf32> to vector<16x1xf32>
    %cst_36 = arith.constant 3.200000e+01 : f32
    %86 = vector.broadcast %cst_36 : f32 to vector<16x1xf32>
    %87 = arith.divf %85, %86 : vector<16x1xf32>
    %88 = vector.broadcast %80 : vector<16x1xf32> to vector<16x32xf32>
    %89 = arith.subf %18, %88 : vector<16x32xf32>
    %cst_37 = arith.constant 9.99999974E-6 : f32
    %90 = vector.broadcast %cst_37 : f32 to vector<16x1xf32>
    %91 = arith.addf %87, %90 : vector<16x1xf32>
    %92 = math.rsqrt %91 : vector<16x1xf32>
    %93 = vector.broadcast %92 : vector<16x1xf32> to vector<16x32xf32>
    %94 = arith.mulf %89, %93 : vector<16x32xf32>
    %95 = vector.broadcast %74 : vector<1x32xf32> to vector<16x32xf32>
    %96 = arith.mulf %94, %95 : vector<16x32xf32>
    %97 = vector.broadcast %76 : vector<1x32xf32> to vector<16x32xf32>
    %98 = arith.addf %96, %97 : vector<16x32xf32>
    %c0_38 = arith.constant 0 : index
    %c1 = arith.constant 1 : index
    %c0_39 = arith.constant 0 : index
    %99 = vector.load %arg4[%c0_38, %c1, %c0_39] : memref<2x3x32xf32, #tpu.memory_space<vmem>>, vector<1x1x32xf32>
    %100 = vector.shape_cast %99 : vector<1x1x32xf32> to vector<1x32xf32>
    %c0_40 = arith.constant 0 : index
    %c1_41 = arith.constant 1 : index
    %c0_42 = arith.constant 0 : index
    %101 = vector.load %arg5[%c0_40, %c1_41, %c0_42] : memref<2x3x32xf32, #tpu.memory_space<vmem>>, vector<1x1x32xf32>
    %102 = vector.shape_cast %101 : vector<1x1x32xf32> to vector<1x32xf32>
    %cst_43 = arith.constant dense<0.000000e+00> : vector<16xf32>
    %103 = vector.multi_reduction <add>, %18, %cst_43 [1] : vector<16x32xf32> to vector<16xf32>
    %104 = vector.shape_cast %103 : vector<16xf32> to vector<16x1xf32>
    %cst_44 = arith.constant 3.200000e+01 : f32
    %105 = vector.broadcast %cst_44 : f32 to vector<16x1xf32>
    %106 = arith.divf %104, %105 : vector<16x1xf32>
    %107 = vector.broadcast %106 : vector<16x1xf32> to vector<16x32xf32>
    %108 = arith.subf %18, %107 : vector<16x32xf32>
    %109 = arith.mulf %108, %108 : vector<16x32xf32>
    %cst_45 = arith.constant dense<0.000000e+00> : vector<16xf32>
    %110 = vector.multi_reduction <add>, %109, %cst_45 [1] : vector<16x32xf32> to vector<16xf32>
    %111 = vector.shape_cast %110 : vector<16xf32> to vector<16x1xf32>
    %cst_46 = arith.constant 3.200000e+01 : f32
    %112 = vector.broadcast %cst_46 : f32 to vector<16x1xf32>
    %113 = arith.divf %111, %112 : vector<16x1xf32>
    %114 = vector.broadcast %106 : vector<16x1xf32> to vector<16x32xf32>
    %115 = arith.subf %18, %114 : vector<16x32xf32>
    %cst_47 = arith.constant 9.99999974E-6 : f32
    %116 = vector.broadcast %cst_47 : f32 to vector<16x1xf32>
    %117 = arith.addf %113, %116 : vector<16x1xf32>
    %118 = math.rsqrt %117 : vector<16x1xf32>
    %119 = vector.broadcast %118 : vector<16x1xf32> to vector<16x32xf32>
    %120 = arith.mulf %115, %119 : vector<16x32xf32>
    %121 = vector.broadcast %100 : vector<1x32xf32> to vector<16x32xf32>
    %122 = arith.mulf %120, %121 : vector<16x32xf32>
    %123 = vector.broadcast %102 : vector<1x32xf32> to vector<16x32xf32>
    %124 = arith.addf %122, %123 : vector<16x32xf32>
    %125 = arith.truncf %98 : vector<16x32xf32> to vector<16x32xbf16>
    %c0_48 = arith.constant 0 : index
    %c0_49 = arith.constant 0 : index
    %c0_50 = arith.constant 0 : index
    %126 = vector.load %arg6[%c0_48, %c0_49, %c0_50] : memref<2x32x96xbf16, #tpu.memory_space<vmem>>, vector<1x32x96xbf16>
    %127 = vector.shape_cast %126 : vector<1x32x96xbf16> to vector<32x96xbf16>
    %cst_51 = arith.constant dense<0.000000e+00> : vector<16x96xf32>
    %128 = tpu.matmul %125, %127, %cst_51 {dimension_numbers = #tpu.dot_dimension_numbers<[1], [0], [0], [1], [0, 0, 1, 1], [], []>} : vector<16x32xbf16>, vector<32x96xbf16>, vector<16x96xf32> -> vector<16x96xf32>
    %cst_52 = arith.constant 0.000000e+00 : f32
    %129 = vector.broadcast %cst_52 : f32 to vector<16x32xf32>
    %130 = vector.extract_strided_slice %128 {offsets = [0, 0], sizes = [16, 32], strides = [1, 1]} : vector<16x96xf32> to vector<16x32xf32>
    %c1_i32_53 = arith.constant 1 : i32
    %131 = tpu.dynamic_rotate %130 by %c1_i32_53 dim 0 : vector<16x32xf32>, i32 -> vector<16x32xf32>
    %132 = vector.broadcast %68 : vector<16x1xf32> to vector<16x32xf32>
    %133 = arith.mulf %131, %132 : vector<16x32xf32>
    %134 = arith.addf %129, %133 : vector<16x32xf32>
    %135 = vector.extract_strided_slice %128 {offsets = [0, 32], sizes = [16, 32], strides = [1, 1]} : vector<16x96xf32> to vector<16x32xf32>
    %136 = vector.broadcast %70 : vector<16x1xf32> to vector<16x32xf32>
    %137 = arith.mulf %135, %136 : vector<16x32xf32>
    %138 = arith.addf %134, %137 : vector<16x32xf32>
    %139 = vector.extract_strided_slice %128 {offsets = [0, 64], sizes = [16, 32], strides = [1, 1]} : vector<16x96xf32> to vector<16x32xf32>
    %c15_i32 = arith.constant 15 : i32
    %140 = tpu.dynamic_rotate %139 by %c15_i32 dim 0 : vector<16x32xf32>, i32 -> vector<16x32xf32>
    %141 = vector.broadcast %72 : vector<16x1xf32> to vector<16x32xf32>
    %142 = arith.mulf %140, %141 : vector<16x32xf32>
    %143 = arith.addf %138, %142 : vector<16x32xf32>
    %c0_54 = arith.constant 0 : index
    %c0_55 = arith.constant 0 : index
    %c0_56 = arith.constant 0 : index
    %144 = vector.load %arg7[%c0_54, %c0_55, %c0_56] : memref<2x1x32xf32, #tpu.memory_space<vmem>>, vector<1x1x32xf32>
    %145 = vector.shape_cast %144 : vector<1x1x32xf32> to vector<1x32xf32>
    %146 = vector.broadcast %145 : vector<1x32xf32> to vector<16x32xf32>
    %147 = arith.addf %143, %146 : vector<16x32xf32>
    %148 = arith.truncf %124 : vector<16x32xf32> to vector<16x32xbf16>
    %c0_57 = arith.constant 0 : index
    %c0_58 = arith.constant 0 : index
    %c0_59 = arith.constant 0 : index
    %149 = vector.load %arg8[%c0_57, %c0_58, %c0_59] : memref<2x32x96xbf16, #tpu.memory_space<vmem>>, vector<1x32x96xbf16>
    %150 = vector.shape_cast %149 : vector<1x32x96xbf16> to vector<32x96xbf16>
    %cst_60 = arith.constant dense<0.000000e+00> : vector<16x96xf32>
    %151 = tpu.matmul %148, %150, %cst_60 {dimension_numbers = #tpu.dot_dimension_numbers<[1], [0], [0], [1], [0, 0, 1, 1], [], []>} : vector<16x32xbf16>, vector<32x96xbf16>, vector<16x96xf32> -> vector<16x96xf32>
    %c0_61 = arith.constant 0 : index
    %c0_62 = arith.constant 0 : index
    %c0_63 = arith.constant 0 : index
    %152 = vector.load %arg9[%c0_61, %c0_62, %c0_63] : memref<2x1x96xf32, #tpu.memory_space<vmem>>, vector<1x1x96xf32>
    %153 = vector.shape_cast %152 : vector<1x1x96xf32> to vector<1x96xf32>
    %154 = vector.broadcast %153 : vector<1x96xf32> to vector<16x96xf32>
    %155 = arith.addf %151, %154 : vector<16x96xf32>
    %c0_64 = arith.constant 0 : index
    %c0_65 = arith.constant 0 : index
    %c0_66 = arith.constant 0 : index
    %156 = vector.load %arg10[%c0_64, %c0_65, %c0_66] : memref<2x16x64xbf16, #tpu.memory_space<vmem>>, vector<1x16x64xbf16>
    %157 = vector.shape_cast %156 : vector<1x16x64xbf16> to vector<16x64xbf16>
    %cst_67 = arith.constant dense<0.000000e+00> : vector<16x64xf32>
    %158 = tpu.matmul %21, %157, %cst_67 {dimension_numbers = #tpu.dot_dimension_numbers<[1], [0], [0], [1], [0, 0, 1, 1], [], []>} : vector<16x16xbf16>, vector<16x64xbf16>, vector<16x64xf32> -> vector<16x64xf32>
    %159 = vector.extract_strided_slice %155 {offsets = [0, 0], sizes = [16, 32], strides = [1, 1]} : vector<16x96xf32> to vector<16x32xf32>
    %160 = vector.extract_strided_slice %158 {offsets = [0, 0], sizes = [16, 32], strides = [1, 1]} : vector<16x64xf32> to vector<16x32xf32>
    %161 = arith.addf %159, %160 : vector<16x32xf32>
    %162 = vector.extract_strided_slice %155 {offsets = [0, 32], sizes = [16, 32], strides = [1, 1]} : vector<16x96xf32> to vector<16x32xf32>
    %163 = vector.extract_strided_slice %158 {offsets = [0, 32], sizes = [16, 32], strides = [1, 1]} : vector<16x64xf32> to vector<16x32xf32>
    %164 = arith.addf %162, %163 : vector<16x32xf32>
    %165 = vector.extract_strided_slice %155 {offsets = [0, 64], sizes = [16, 32], strides = [1, 1]} : vector<16x96xf32> to vector<16x32xf32>
    %cst_68 = arith.constant 0.000000e+00 : f32
    %166 = vector.broadcast %cst_68 : f32 to vector<16x3xf32>
    %c1_i32_69 = arith.constant 1 : i32
    %167 = tpu.dynamic_rotate %164 by %c1_i32_69 dim 0 : vector<16x32xf32>, i32 -> vector<16x32xf32>
    %168 = vector.broadcast %68 : vector<16x1xf32> to vector<16x32xf32>
    %169 = arith.mulf %167, %168 : vector<16x32xf32>
    %170 = arith.mulf %161, %169 : vector<16x32xf32>
    %cst_70 = arith.constant dense<0.000000e+00> : vector<16xf32>
    %171 = vector.multi_reduction <add>, %170, %cst_70 [1] : vector<16x32xf32> to vector<16xf32>
    %172 = vector.shape_cast %171 : vector<16xf32> to vector<16x1xf32>
    %cst_71 = arith.constant 0.176776692 : f32
    %173 = vector.broadcast %cst_71 : f32 to vector<16x1xf32>
    %174 = arith.mulf %172, %173 : vector<16x1xf32>
    %cst_72 = arith.constant 9.99999543E-7 : f32
    %cst_73 = arith.constant -13.8155107 : f32
    %175 = vector.broadcast %cst_72 : f32 to vector<16x1xf32>
    %176 = vector.broadcast %cst_73 : f32 to vector<16x1xf32>
    %177 = arith.select %48, %175, %176 : vector<16x1xi1>, vector<16x1xf32>
    %178 = arith.addf %174, %177 : vector<16x1xf32>
    %c0_i32_74 = arith.constant 0 : i32
    %179 = vector.broadcast %c0_i32_74 : i32 to vector<1x3xi32>
    %180 = arith.cmpi eq, %39, %179 : vector<1x3xi32>
    %cst_75 = arith.constant 0.000000e+00 : f32
    %181 = vector.shape_cast %180 : vector<1x3xi1> to vector<1x3xi1>
    %182 = vector.broadcast %181 : vector<1x3xi1> to vector<16x3xi1>
    %183 = vector.shape_cast %178 : vector<16x1xf32> to vector<16x1xf32>
    %184 = vector.broadcast %183 : vector<16x1xf32> to vector<16x3xf32>
    %185 = vector.broadcast %cst_75 : f32 to vector<16x3xf32>
    %186 = arith.select %182, %184, %185 : vector<16x3xi1>, vector<16x3xf32>
    %187 = arith.addf %166, %186 : vector<16x3xf32>
    %188 = vector.broadcast %70 : vector<16x1xf32> to vector<16x32xf32>
    %189 = arith.mulf %164, %188 : vector<16x32xf32>
    %190 = arith.mulf %161, %189 : vector<16x32xf32>
    %cst_76 = arith.constant dense<0.000000e+00> : vector<16xf32>
    %191 = vector.multi_reduction <add>, %190, %cst_76 [1] : vector<16x32xf32> to vector<16xf32>
    %192 = vector.shape_cast %191 : vector<16xf32> to vector<16x1xf32>
    %cst_77 = arith.constant 0.176776692 : f32
    %193 = vector.broadcast %cst_77 : f32 to vector<16x1xf32>
    %194 = arith.mulf %192, %193 : vector<16x1xf32>
    %cst_78 = arith.constant 9.99999543E-7 : f32
    %cst_79 = arith.constant -13.8155107 : f32
    %195 = vector.broadcast %cst_78 : f32 to vector<16x1xf32>
    %196 = vector.broadcast %cst_79 : f32 to vector<16x1xf32>
    %197 = arith.select %57, %195, %196 : vector<16x1xi1>, vector<16x1xf32>
    %198 = arith.addf %194, %197 : vector<16x1xf32>
    %c1_i32_80 = arith.constant 1 : i32
    %199 = vector.broadcast %c1_i32_80 : i32 to vector<1x3xi32>
    %200 = arith.cmpi eq, %39, %199 : vector<1x3xi32>
    %cst_81 = arith.constant 0.000000e+00 : f32
    %201 = vector.shape_cast %200 : vector<1x3xi1> to vector<1x3xi1>
    %202 = vector.broadcast %201 : vector<1x3xi1> to vector<16x3xi1>
    %203 = vector.shape_cast %198 : vector<16x1xf32> to vector<16x1xf32>
    %204 = vector.broadcast %203 : vector<16x1xf32> to vector<16x3xf32>
    %205 = vector.broadcast %cst_81 : f32 to vector<16x3xf32>
    %206 = arith.select %202, %204, %205 : vector<16x3xi1>, vector<16x3xf32>
    %207 = arith.addf %187, %206 : vector<16x3xf32>
    %c15_i32_82 = arith.constant 15 : i32
    %208 = tpu.dynamic_rotate %164 by %c15_i32_82 dim 0 : vector<16x32xf32>, i32 -> vector<16x32xf32>
    %209 = vector.broadcast %72 : vector<16x1xf32> to vector<16x32xf32>
    %210 = arith.mulf %208, %209 : vector<16x32xf32>
    %211 = arith.mulf %161, %210 : vector<16x32xf32>
    %cst_83 = arith.constant dense<0.000000e+00> : vector<16xf32>
    %212 = vector.multi_reduction <add>, %211, %cst_83 [1] : vector<16x32xf32> to vector<16xf32>
    %213 = vector.shape_cast %212 : vector<16xf32> to vector<16x1xf32>
    %cst_84 = arith.constant 0.176776692 : f32
    %214 = vector.broadcast %cst_84 : f32 to vector<16x1xf32>
    %215 = arith.mulf %213, %214 : vector<16x1xf32>
    %cst_85 = arith.constant 9.99999543E-7 : f32
    %cst_86 = arith.constant -13.8155107 : f32
    %216 = vector.broadcast %cst_85 : f32 to vector<16x1xf32>
    %217 = vector.broadcast %cst_86 : f32 to vector<16x1xf32>
    %218 = arith.select %66, %216, %217 : vector<16x1xi1>, vector<16x1xf32>
    %219 = arith.addf %215, %218 : vector<16x1xf32>
    %c2_i32 = arith.constant 2 : i32
    %220 = vector.broadcast %c2_i32 : i32 to vector<1x3xi32>
    %221 = arith.cmpi eq, %39, %220 : vector<1x3xi32>
    %cst_87 = arith.constant 0.000000e+00 : f32
    %222 = vector.shape_cast %221 : vector<1x3xi1> to vector<1x3xi1>
    %223 = vector.broadcast %222 : vector<1x3xi1> to vector<16x3xi1>
    %224 = vector.shape_cast %219 : vector<16x1xf32> to vector<16x1xf32>
    %225 = vector.broadcast %224 : vector<16x1xf32> to vector<16x3xf32>
    %226 = vector.broadcast %cst_87 : f32 to vector<16x3xf32>
    %227 = arith.select %223, %225, %226 : vector<16x3xi1>, vector<16x3xf32>
    %228 = arith.addf %207, %227 : vector<16x3xf32>
    %cst_88 = arith.constant dense<0xFF800000> : vector<16xf32>
    %229 = vector.multi_reduction <maximumf>, %228, %cst_88 [1] : vector<16x3xf32> to vector<16xf32>
    %230 = vector.shape_cast %229 : vector<16xf32> to vector<16x1xf32>
    %231 = vector.broadcast %230 : vector<16x1xf32> to vector<16x3xf32>
    %232 = arith.subf %228, %231 : vector<16x3xf32>
    %233 = math.exp %232 : vector<16x3xf32>
    %cst_89 = arith.constant dense<0.000000e+00> : vector<16xf32>
    %234 = vector.multi_reduction <add>, %233, %cst_89 [1] : vector<16x3xf32> to vector<16xf32>
    %235 = vector.shape_cast %234 : vector<16xf32> to vector<16x1xf32>
    %236 = tpu.reciprocal %235 : vector<16x1xf32> -> vector<16x1xf32>
    %237 = vector.broadcast %236 : vector<16x1xf32> to vector<16x3xf32>
    %238 = arith.mulf %233, %237 : vector<16x3xf32>
    %cst_90 = arith.constant 0.000000e+00 : f32
    %239 = vector.broadcast %cst_90 : f32 to vector<16x32xf32>
    %c1_i32_91 = arith.constant 1 : i32
    %240 = tpu.dynamic_rotate %165 by %c1_i32_91 dim 0 : vector<16x32xf32>, i32 -> vector<16x32xf32>
    %241 = vector.broadcast %68 : vector<16x1xf32> to vector<16x32xf32>
    %242 = arith.mulf %240, %241 : vector<16x32xf32>
    %243 = vector.extract_strided_slice %238 {offsets = [0, 0], sizes = [16, 1], strides = [1, 1]} : vector<16x3xf32> to vector<16x1xf32>
    %244 = vector.broadcast %243 : vector<16x1xf32> to vector<16x32xf32>
    %245 = arith.mulf %244, %242 : vector<16x32xf32>
    %246 = arith.addf %239, %245 : vector<16x32xf32>
    %247 = vector.broadcast %70 : vector<16x1xf32> to vector<16x32xf32>
    %248 = arith.mulf %165, %247 : vector<16x32xf32>
    %249 = vector.extract_strided_slice %238 {offsets = [0, 1], sizes = [16, 1], strides = [1, 1]} : vector<16x3xf32> to vector<16x1xf32>
    %250 = vector.broadcast %249 : vector<16x1xf32> to vector<16x32xf32>
    %251 = arith.mulf %250, %248 : vector<16x32xf32>
    %252 = arith.addf %246, %251 : vector<16x32xf32>
    %c15_i32_92 = arith.constant 15 : i32
    %253 = tpu.dynamic_rotate %165 by %c15_i32_92 dim 0 : vector<16x32xf32>, i32 -> vector<16x32xf32>
    %254 = vector.broadcast %72 : vector<16x1xf32> to vector<16x32xf32>
    %255 = arith.mulf %253, %254 : vector<16x32xf32>
    %256 = vector.extract_strided_slice %238 {offsets = [0, 2], sizes = [16, 1], strides = [1, 1]} : vector<16x3xf32> to vector<16x1xf32>
    %257 = vector.broadcast %256 : vector<16x1xf32> to vector<16x32xf32>
    %258 = arith.mulf %257, %255 : vector<16x32xf32>
    %259 = arith.addf %252, %258 : vector<16x32xf32>
    %260 = arith.addf %147, %259 : vector<16x32xf32>
    %c0_93 = arith.constant 0 : index
    %c2 = arith.constant 2 : index
    %c0_94 = arith.constant 0 : index
    %261 = vector.load %arg4[%c0_93, %c2, %c0_94] : memref<2x3x32xf32, #tpu.memory_space<vmem>>, vector<1x1x32xf32>
    %262 = vector.shape_cast %261 : vector<1x1x32xf32> to vector<1x32xf32>
    %c0_95 = arith.constant 0 : index
    %c2_96 = arith.constant 2 : index
    %c0_97 = arith.constant 0 : index
    %263 = vector.load %arg5[%c0_95, %c2_96, %c0_97] : memref<2x3x32xf32, #tpu.memory_space<vmem>>, vector<1x1x32xf32>
    %264 = vector.shape_cast %263 : vector<1x1x32xf32> to vector<1x32xf32>
    %cst_98 = arith.constant dense<0.000000e+00> : vector<16xf32>
    %265 = vector.multi_reduction <add>, %260, %cst_98 [1] : vector<16x32xf32> to vector<16xf32>
    %266 = vector.shape_cast %265 : vector<16xf32> to vector<16x1xf32>
    %cst_99 = arith.constant 3.200000e+01 : f32
    %267 = vector.broadcast %cst_99 : f32 to vector<16x1xf32>
    %268 = arith.divf %266, %267 : vector<16x1xf32>
    %269 = vector.broadcast %268 : vector<16x1xf32> to vector<16x32xf32>
    %270 = arith.subf %260, %269 : vector<16x32xf32>
    %271 = arith.mulf %270, %270 : vector<16x32xf32>
    %cst_100 = arith.constant dense<0.000000e+00> : vector<16xf32>
    %272 = vector.multi_reduction <add>, %271, %cst_100 [1] : vector<16x32xf32> to vector<16xf32>
    %273 = vector.shape_cast %272 : vector<16xf32> to vector<16x1xf32>
    %cst_101 = arith.constant 3.200000e+01 : f32
    %274 = vector.broadcast %cst_101 : f32 to vector<16x1xf32>
    %275 = arith.divf %273, %274 : vector<16x1xf32>
    %276 = vector.broadcast %268 : vector<16x1xf32> to vector<16x32xf32>
    %277 = arith.subf %260, %276 : vector<16x32xf32>
    %cst_102 = arith.constant 9.99999974E-6 : f32
    %278 = vector.broadcast %cst_102 : f32 to vector<16x1xf32>
    %279 = arith.addf %275, %278 : vector<16x1xf32>
    %280 = math.rsqrt %279 : vector<16x1xf32>
    %281 = vector.broadcast %280 : vector<16x1xf32> to vector<16x32xf32>
    %282 = arith.mulf %277, %281 : vector<16x32xf32>
    %283 = vector.broadcast %262 : vector<1x32xf32> to vector<16x32xf32>
    %284 = arith.mulf %282, %283 : vector<16x32xf32>
    %285 = vector.broadcast %264 : vector<1x32xf32> to vector<16x32xf32>
    %286 = arith.addf %284, %285 : vector<16x32xf32>
    %287 = arith.truncf %286 : vector<16x32xf32> to vector<16x32xbf16>
    %c0_103 = arith.constant 0 : index
    %c0_104 = arith.constant 0 : index
    %c0_105 = arith.constant 0 : index
    %c0_106 = arith.constant 0 : index
    %288 = vector.load %arg11[%c0_103, %c0_104, %c0_105, %c0_106] : memref<2x2x32x32xbf16, #tpu.memory_space<vmem>>, vector<1x1x32x32xbf16>
    %289 = vector.shape_cast %288 : vector<1x1x32x32xbf16> to vector<32x32xbf16>
    %cst_107 = arith.constant dense<0.000000e+00> : vector<16x32xf32>
    %290 = tpu.matmul %287, %289, %cst_107 {dimension_numbers = #tpu.dot_dimension_numbers<[1], [0], [0], [1], [0, 0, 1, 1], [], []>} : vector<16x32xbf16>, vector<32x32xbf16>, vector<16x32xf32> -> vector<16x32xf32>
    %c0_108 = arith.constant 0 : index
    %c0_109 = arith.constant 0 : index
    %c0_110 = arith.constant 0 : index
    %291 = vector.load %arg12[%c0_108, %c0_109, %c0_110] : memref<2x2x32xf32, #tpu.memory_space<vmem>>, vector<1x1x32xf32>
    %292 = vector.shape_cast %291 : vector<1x1x32xf32> to vector<1x32xf32>
    %293 = vector.broadcast %292 : vector<1x32xf32> to vector<16x32xf32>
    %294 = arith.addf %290, %293 : vector<16x32xf32>
    %cst_111 = arith.constant 5.000000e-01 : f32
    %295 = vector.broadcast %cst_111 : f32 to vector<16x32xf32>
    %296 = arith.mulf %295, %294 : vector<16x32xf32>
    %cst_112 = arith.constant 0.707106769 : f32
    %297 = vector.broadcast %cst_112 : f32 to vector<16x32xf32>
    %298 = arith.mulf %294, %297 : vector<16x32xf32>
    %299 = math.erf %298 : vector<16x32xf32>
    %cst_113 = arith.constant 1.000000e+00 : f32
    %300 = vector.broadcast %cst_113 : f32 to vector<16x32xf32>
    %301 = arith.addf %300, %299 : vector<16x32xf32>
    %302 = arith.mulf %296, %301 : vector<16x32xf32>
    %303 = arith.truncf %302 : vector<16x32xf32> to vector<16x32xbf16>
    %c0_114 = arith.constant 0 : index
    %c1_115 = arith.constant 1 : index
    %c0_116 = arith.constant 0 : index
    %c0_117 = arith.constant 0 : index
    %304 = vector.load %arg11[%c0_114, %c1_115, %c0_116, %c0_117] : memref<2x2x32x32xbf16, #tpu.memory_space<vmem>>, vector<1x1x32x32xbf16>
    %305 = vector.shape_cast %304 : vector<1x1x32x32xbf16> to vector<32x32xbf16>
    %cst_118 = arith.constant dense<0.000000e+00> : vector<16x32xf32>
    %306 = tpu.matmul %303, %305, %cst_118 {dimension_numbers = #tpu.dot_dimension_numbers<[1], [0], [0], [1], [0, 0, 1, 1], [], []>} : vector<16x32xbf16>, vector<32x32xbf16>, vector<16x32xf32> -> vector<16x32xf32>
    %c0_119 = arith.constant 0 : index
    %c1_120 = arith.constant 1 : index
    %c0_121 = arith.constant 0 : index
    %307 = vector.load %arg12[%c0_119, %c1_120, %c0_121] : memref<2x2x32xf32, #tpu.memory_space<vmem>>, vector<1x1x32xf32>
    %308 = vector.shape_cast %307 : vector<1x1x32xf32> to vector<1x32xf32>
    %309 = vector.broadcast %308 : vector<1x32xf32> to vector<16x32xf32>
    %310 = arith.addf %306, %309 : vector<16x32xf32>
    %311 = arith.addf %18, %310 : vector<16x32xf32>
    %c-2_i32 = arith.constant -2 : i32
    %312 = vector.broadcast %c-2_i32 : i32 to vector<16x1xi32>
    %313 = arith.addi %38, %312 : vector<16x1xi32>
    %c0_i32_122 = arith.constant 0 : i32
    %314 = vector.broadcast %c0_i32_122 : i32 to vector<16x1xi32>
    %315 = arith.cmpi sge, %313, %314 : vector<16x1xi32>
    %c-2_i32_123 = arith.constant -2 : i32
    %316 = vector.broadcast %c-2_i32_123 : i32 to vector<16x1xi32>
    %317 = arith.addi %38, %316 : vector<16x1xi32>
    %c16_i32_124 = arith.constant 16 : i32
    %318 = vector.broadcast %c16_i32_124 : i32 to vector<16x1xi32>
    %319 = arith.cmpi slt, %317, %318 : vector<16x1xi32>
    %320 = arith.andi %315, %319 : vector<16x1xi1>
    %c0_i32_125 = arith.constant 0 : i32
    %321 = vector.broadcast %c0_i32_125 : i32 to vector<16x1xi32>
    %322 = arith.addi %38, %321 : vector<16x1xi32>
    %c0_i32_126 = arith.constant 0 : i32
    %323 = vector.broadcast %c0_i32_126 : i32 to vector<16x1xi32>
    %324 = arith.cmpi sge, %322, %323 : vector<16x1xi32>
    %c0_i32_127 = arith.constant 0 : i32
    %325 = vector.broadcast %c0_i32_127 : i32 to vector<16x1xi32>
    %326 = arith.addi %38, %325 : vector<16x1xi32>
    %c16_i32_128 = arith.constant 16 : i32
    %327 = vector.broadcast %c16_i32_128 : i32 to vector<16x1xi32>
    %328 = arith.cmpi slt, %326, %327 : vector<16x1xi32>
    %329 = arith.andi %324, %328 : vector<16x1xi1>
    %c2_i32_129 = arith.constant 2 : i32
    %330 = vector.broadcast %c2_i32_129 : i32 to vector<16x1xi32>
    %331 = arith.addi %38, %330 : vector<16x1xi32>
    %c0_i32_130 = arith.constant 0 : i32
    %332 = vector.broadcast %c0_i32_130 : i32 to vector<16x1xi32>
    %333 = arith.cmpi sge, %331, %332 : vector<16x1xi32>
    %c2_i32_131 = arith.constant 2 : i32
    %334 = vector.broadcast %c2_i32_131 : i32 to vector<16x1xi32>
    %335 = arith.addi %38, %334 : vector<16x1xi32>
    %c16_i32_132 = arith.constant 16 : i32
    %336 = vector.broadcast %c16_i32_132 : i32 to vector<16x1xi32>
    %337 = arith.cmpi slt, %335, %336 : vector<16x1xi32>
    %338 = arith.andi %333, %337 : vector<16x1xi1>
    %339 = arith.extui %320 : vector<16x1xi1> to vector<16x1xi32>
    %340 = arith.sitofp %339 : vector<16x1xi32> to vector<16x1xf32>
    %341 = arith.extui %329 : vector<16x1xi1> to vector<16x1xi32>
    %342 = arith.sitofp %341 : vector<16x1xi32> to vector<16x1xf32>
    %343 = arith.extui %338 : vector<16x1xi1> to vector<16x1xi32>
    %344 = arith.sitofp %343 : vector<16x1xi32> to vector<16x1xf32>
    %c1_133 = arith.constant 1 : index
    %c0_134 = arith.constant 0 : index
    %c0_135 = arith.constant 0 : index
    %345 = vector.load %arg4[%c1_133, %c0_134, %c0_135] : memref<2x3x32xf32, #tpu.memory_space<vmem>>, vector<1x1x32xf32>
    %346 = vector.shape_cast %345 : vector<1x1x32xf32> to vector<1x32xf32>
    %c1_136 = arith.constant 1 : index
    %c0_137 = arith.constant 0 : index
    %c0_138 = arith.constant 0 : index
    %347 = vector.load %arg5[%c1_136, %c0_137, %c0_138] : memref<2x3x32xf32, #tpu.memory_space<vmem>>, vector<1x1x32xf32>
    %348 = vector.shape_cast %347 : vector<1x1x32xf32> to vector<1x32xf32>
    %cst_139 = arith.constant dense<0.000000e+00> : vector<16xf32>
    %349 = vector.multi_reduction <add>, %311, %cst_139 [1] : vector<16x32xf32> to vector<16xf32>
    %350 = vector.shape_cast %349 : vector<16xf32> to vector<16x1xf32>
    %cst_140 = arith.constant 3.200000e+01 : f32
    %351 = vector.broadcast %cst_140 : f32 to vector<16x1xf32>
    %352 = arith.divf %350, %351 : vector<16x1xf32>
    %353 = vector.broadcast %352 : vector<16x1xf32> to vector<16x32xf32>
    %354 = arith.subf %311, %353 : vector<16x32xf32>
    %355 = arith.mulf %354, %354 : vector<16x32xf32>
    %cst_141 = arith.constant dense<0.000000e+00> : vector<16xf32>
    %356 = vector.multi_reduction <add>, %355, %cst_141 [1] : vector<16x32xf32> to vector<16xf32>
    %357 = vector.shape_cast %356 : vector<16xf32> to vector<16x1xf32>
    %cst_142 = arith.constant 3.200000e+01 : f32
    %358 = vector.broadcast %cst_142 : f32 to vector<16x1xf32>
    %359 = arith.divf %357, %358 : vector<16x1xf32>
    %360 = vector.broadcast %352 : vector<16x1xf32> to vector<16x32xf32>
    %361 = arith.subf %311, %360 : vector<16x32xf32>
    %cst_143 = arith.constant 9.99999974E-6 : f32
    %362 = vector.broadcast %cst_143 : f32 to vector<16x1xf32>
    %363 = arith.addf %359, %362 : vector<16x1xf32>
    %364 = math.rsqrt %363 : vector<16x1xf32>
    %365 = vector.broadcast %364 : vector<16x1xf32> to vector<16x32xf32>
    %366 = arith.mulf %361, %365 : vector<16x32xf32>
    %367 = vector.broadcast %346 : vector<1x32xf32> to vector<16x32xf32>
    %368 = arith.mulf %366, %367 : vector<16x32xf32>
    %369 = vector.broadcast %348 : vector<1x32xf32> to vector<16x32xf32>
    %370 = arith.addf %368, %369 : vector<16x32xf32>
    %c1_144 = arith.constant 1 : index
    %c1_145 = arith.constant 1 : index
    %c0_146 = arith.constant 0 : index
    %371 = vector.load %arg4[%c1_144, %c1_145, %c0_146] : memref<2x3x32xf32, #tpu.memory_space<vmem>>, vector<1x1x32xf32>
    %372 = vector.shape_cast %371 : vector<1x1x32xf32> to vector<1x32xf32>
    %c1_147 = arith.constant 1 : index
    %c1_148 = arith.constant 1 : index
    %c0_149 = arith.constant 0 : index
    %373 = vector.load %arg5[%c1_147, %c1_148, %c0_149] : memref<2x3x32xf32, #tpu.memory_space<vmem>>, vector<1x1x32xf32>
    %374 = vector.shape_cast %373 : vector<1x1x32xf32> to vector<1x32xf32>
    %cst_150 = arith.constant dense<0.000000e+00> : vector<16xf32>
    %375 = vector.multi_reduction <add>, %311, %cst_150 [1] : vector<16x32xf32> to vector<16xf32>
    %376 = vector.shape_cast %375 : vector<16xf32> to vector<16x1xf32>
    %cst_151 = arith.constant 3.200000e+01 : f32
    %377 = vector.broadcast %cst_151 : f32 to vector<16x1xf32>
    %378 = arith.divf %376, %377 : vector<16x1xf32>
    %379 = vector.broadcast %378 : vector<16x1xf32> to vector<16x32xf32>
    %380 = arith.subf %311, %379 : vector<16x32xf32>
    %381 = arith.mulf %380, %380 : vector<16x32xf32>
    %cst_152 = arith.constant dense<0.000000e+00> : vector<16xf32>
    %382 = vector.multi_reduction <add>, %381, %cst_152 [1] : vector<16x32xf32> to vector<16xf32>
    %383 = vector.shape_cast %382 : vector<16xf32> to vector<16x1xf32>
    %cst_153 = arith.constant 3.200000e+01 : f32
    %384 = vector.broadcast %cst_153 : f32 to vector<16x1xf32>
    %385 = arith.divf %383, %384 : vector<16x1xf32>
    %386 = vector.broadcast %378 : vector<16x1xf32> to vector<16x32xf32>
    %387 = arith.subf %311, %386 : vector<16x32xf32>
    %cst_154 = arith.constant 9.99999974E-6 : f32
    %388 = vector.broadcast %cst_154 : f32 to vector<16x1xf32>
    %389 = arith.addf %385, %388 : vector<16x1xf32>
    %390 = math.rsqrt %389 : vector<16x1xf32>
    %391 = vector.broadcast %390 : vector<16x1xf32> to vector<16x32xf32>
    %392 = arith.mulf %387, %391 : vector<16x32xf32>
    %393 = vector.broadcast %372 : vector<1x32xf32> to vector<16x32xf32>
    %394 = arith.mulf %392, %393 : vector<16x32xf32>
    %395 = vector.broadcast %374 : vector<1x32xf32> to vector<16x32xf32>
    %396 = arith.addf %394, %395 : vector<16x32xf32>
    %397 = arith.truncf %370 : vector<16x32xf32> to vector<16x32xbf16>
    %c1_155 = arith.constant 1 : index
    %c0_156 = arith.constant 0 : index
    %c0_157 = arith.constant 0 : index
    %398 = vector.load %arg6[%c1_155, %c0_156, %c0_157] : memref<2x32x96xbf16, #tpu.memory_space<vmem>>, vector<1x32x96xbf16>
    %399 = vector.shape_cast %398 : vector<1x32x96xbf16> to vector<32x96xbf16>
    %cst_158 = arith.constant dense<0.000000e+00> : vector<16x96xf32>
    %400 = tpu.matmul %397, %399, %cst_158 {dimension_numbers = #tpu.dot_dimension_numbers<[1], [0], [0], [1], [0, 0, 1, 1], [], []>} : vector<16x32xbf16>, vector<32x96xbf16>, vector<16x96xf32> -> vector<16x96xf32>
    %cst_159 = arith.constant 0.000000e+00 : f32
    %401 = vector.broadcast %cst_159 : f32 to vector<16x32xf32>
    %402 = vector.extract_strided_slice %400 {offsets = [0, 0], sizes = [16, 32], strides = [1, 1]} : vector<16x96xf32> to vector<16x32xf32>
    %c2_i32_160 = arith.constant 2 : i32
    %403 = tpu.dynamic_rotate %402 by %c2_i32_160 dim 0 : vector<16x32xf32>, i32 -> vector<16x32xf32>
    %404 = vector.broadcast %340 : vector<16x1xf32> to vector<16x32xf32>
    %405 = arith.mulf %403, %404 : vector<16x32xf32>
    %406 = arith.addf %401, %405 : vector<16x32xf32>
    %407 = vector.extract_strided_slice %400 {offsets = [0, 32], sizes = [16, 32], strides = [1, 1]} : vector<16x96xf32> to vector<16x32xf32>
    %408 = vector.broadcast %342 : vector<16x1xf32> to vector<16x32xf32>
    %409 = arith.mulf %407, %408 : vector<16x32xf32>
    %410 = arith.addf %406, %409 : vector<16x32xf32>
    %411 = vector.extract_strided_slice %400 {offsets = [0, 64], sizes = [16, 32], strides = [1, 1]} : vector<16x96xf32> to vector<16x32xf32>
    %c14_i32 = arith.constant 14 : i32
    %412 = tpu.dynamic_rotate %411 by %c14_i32 dim 0 : vector<16x32xf32>, i32 -> vector<16x32xf32>
    %413 = vector.broadcast %344 : vector<16x1xf32> to vector<16x32xf32>
    %414 = arith.mulf %412, %413 : vector<16x32xf32>
    %415 = arith.addf %410, %414 : vector<16x32xf32>
    %c1_161 = arith.constant 1 : index
    %c0_162 = arith.constant 0 : index
    %c0_163 = arith.constant 0 : index
    %416 = vector.load %arg7[%c1_161, %c0_162, %c0_163] : memref<2x1x32xf32, #tpu.memory_space<vmem>>, vector<1x1x32xf32>
    %417 = vector.shape_cast %416 : vector<1x1x32xf32> to vector<1x32xf32>
    %418 = vector.broadcast %417 : vector<1x32xf32> to vector<16x32xf32>
    %419 = arith.addf %415, %418 : vector<16x32xf32>
    %420 = arith.truncf %396 : vector<16x32xf32> to vector<16x32xbf16>
    %c1_164 = arith.constant 1 : index
    %c0_165 = arith.constant 0 : index
    %c0_166 = arith.constant 0 : index
    %421 = vector.load %arg8[%c1_164, %c0_165, %c0_166] : memref<2x32x96xbf16, #tpu.memory_space<vmem>>, vector<1x32x96xbf16>
    %422 = vector.shape_cast %421 : vector<1x32x96xbf16> to vector<32x96xbf16>
    %cst_167 = arith.constant dense<0.000000e+00> : vector<16x96xf32>
    %423 = tpu.matmul %420, %422, %cst_167 {dimension_numbers = #tpu.dot_dimension_numbers<[1], [0], [0], [1], [0, 0, 1, 1], [], []>} : vector<16x32xbf16>, vector<32x96xbf16>, vector<16x96xf32> -> vector<16x96xf32>
    %c1_168 = arith.constant 1 : index
    %c0_169 = arith.constant 0 : index
    %c0_170 = arith.constant 0 : index
    %424 = vector.load %arg9[%c1_168, %c0_169, %c0_170] : memref<2x1x96xf32, #tpu.memory_space<vmem>>, vector<1x1x96xf32>
    %425 = vector.shape_cast %424 : vector<1x1x96xf32> to vector<1x96xf32>
    %426 = vector.broadcast %425 : vector<1x96xf32> to vector<16x96xf32>
    %427 = arith.addf %423, %426 : vector<16x96xf32>
    %c1_171 = arith.constant 1 : index
    %c0_172 = arith.constant 0 : index
    %c0_173 = arith.constant 0 : index
    %428 = vector.load %arg10[%c1_171, %c0_172, %c0_173] : memref<2x16x64xbf16, #tpu.memory_space<vmem>>, vector<1x16x64xbf16>
    %429 = vector.shape_cast %428 : vector<1x16x64xbf16> to vector<16x64xbf16>
    %cst_174 = arith.constant dense<0.000000e+00> : vector<16x64xf32>
    %430 = tpu.matmul %21, %429, %cst_174 {dimension_numbers = #tpu.dot_dimension_numbers<[1], [0], [0], [1], [0, 0, 1, 1], [], []>} : vector<16x16xbf16>, vector<16x64xbf16>, vector<16x64xf32> -> vector<16x64xf32>
    %431 = vector.extract_strided_slice %427 {offsets = [0, 0], sizes = [16, 32], strides = [1, 1]} : vector<16x96xf32> to vector<16x32xf32>
    %432 = vector.extract_strided_slice %430 {offsets = [0, 0], sizes = [16, 32], strides = [1, 1]} : vector<16x64xf32> to vector<16x32xf32>
    %433 = arith.addf %431, %432 : vector<16x32xf32>
    %434 = vector.extract_strided_slice %427 {offsets = [0, 32], sizes = [16, 32], strides = [1, 1]} : vector<16x96xf32> to vector<16x32xf32>
    %435 = vector.extract_strided_slice %430 {offsets = [0, 32], sizes = [16, 32], strides = [1, 1]} : vector<16x64xf32> to vector<16x32xf32>
    %436 = arith.addf %434, %435 : vector<16x32xf32>
    %437 = vector.extract_strided_slice %427 {offsets = [0, 64], sizes = [16, 32], strides = [1, 1]} : vector<16x96xf32> to vector<16x32xf32>
    %cst_175 = arith.constant 0.000000e+00 : f32
    %438 = vector.broadcast %cst_175 : f32 to vector<16x3xf32>
    %c2_i32_176 = arith.constant 2 : i32
    %439 = tpu.dynamic_rotate %436 by %c2_i32_176 dim 0 : vector<16x32xf32>, i32 -> vector<16x32xf32>
    %440 = vector.broadcast %340 : vector<16x1xf32> to vector<16x32xf32>
    %441 = arith.mulf %439, %440 : vector<16x32xf32>
    %442 = arith.mulf %433, %441 : vector<16x32xf32>
    %cst_177 = arith.constant dense<0.000000e+00> : vector<16xf32>
    %443 = vector.multi_reduction <add>, %442, %cst_177 [1] : vector<16x32xf32> to vector<16xf32>
    %444 = vector.shape_cast %443 : vector<16xf32> to vector<16x1xf32>
    %cst_178 = arith.constant 0.176776692 : f32
    %445 = vector.broadcast %cst_178 : f32 to vector<16x1xf32>
    %446 = arith.mulf %444, %445 : vector<16x1xf32>
    %cst_179 = arith.constant 9.99999543E-7 : f32
    %cst_180 = arith.constant -13.8155107 : f32
    %447 = vector.broadcast %cst_179 : f32 to vector<16x1xf32>
    %448 = vector.broadcast %cst_180 : f32 to vector<16x1xf32>
    %449 = arith.select %320, %447, %448 : vector<16x1xi1>, vector<16x1xf32>
    %450 = arith.addf %446, %449 : vector<16x1xf32>
    %c0_i32_181 = arith.constant 0 : i32
    %451 = vector.broadcast %c0_i32_181 : i32 to vector<1x3xi32>
    %452 = arith.cmpi eq, %39, %451 : vector<1x3xi32>
    %cst_182 = arith.constant 0.000000e+00 : f32
    %453 = vector.shape_cast %452 : vector<1x3xi1> to vector<1x3xi1>
    %454 = vector.broadcast %453 : vector<1x3xi1> to vector<16x3xi1>
    %455 = vector.shape_cast %450 : vector<16x1xf32> to vector<16x1xf32>
    %456 = vector.broadcast %455 : vector<16x1xf32> to vector<16x3xf32>
    %457 = vector.broadcast %cst_182 : f32 to vector<16x3xf32>
    %458 = arith.select %454, %456, %457 : vector<16x3xi1>, vector<16x3xf32>
    %459 = arith.addf %438, %458 : vector<16x3xf32>
    %460 = vector.broadcast %342 : vector<16x1xf32> to vector<16x32xf32>
    %461 = arith.mulf %436, %460 : vector<16x32xf32>
    %462 = arith.mulf %433, %461 : vector<16x32xf32>
    %cst_183 = arith.constant dense<0.000000e+00> : vector<16xf32>
    %463 = vector.multi_reduction <add>, %462, %cst_183 [1] : vector<16x32xf32> to vector<16xf32>
    %464 = vector.shape_cast %463 : vector<16xf32> to vector<16x1xf32>
    %cst_184 = arith.constant 0.176776692 : f32
    %465 = vector.broadcast %cst_184 : f32 to vector<16x1xf32>
    %466 = arith.mulf %464, %465 : vector<16x1xf32>
    %cst_185 = arith.constant 9.99999543E-7 : f32
    %cst_186 = arith.constant -13.8155107 : f32
    %467 = vector.broadcast %cst_185 : f32 to vector<16x1xf32>
    %468 = vector.broadcast %cst_186 : f32 to vector<16x1xf32>
    %469 = arith.select %329, %467, %468 : vector<16x1xi1>, vector<16x1xf32>
    %470 = arith.addf %466, %469 : vector<16x1xf32>
    %c1_i32_187 = arith.constant 1 : i32
    %471 = vector.broadcast %c1_i32_187 : i32 to vector<1x3xi32>
    %472 = arith.cmpi eq, %39, %471 : vector<1x3xi32>
    %cst_188 = arith.constant 0.000000e+00 : f32
    %473 = vector.shape_cast %472 : vector<1x3xi1> to vector<1x3xi1>
    %474 = vector.broadcast %473 : vector<1x3xi1> to vector<16x3xi1>
    %475 = vector.shape_cast %470 : vector<16x1xf32> to vector<16x1xf32>
    %476 = vector.broadcast %475 : vector<16x1xf32> to vector<16x3xf32>
    %477 = vector.broadcast %cst_188 : f32 to vector<16x3xf32>
    %478 = arith.select %474, %476, %477 : vector<16x3xi1>, vector<16x3xf32>
    %479 = arith.addf %459, %478 : vector<16x3xf32>
    %c14_i32_189 = arith.constant 14 : i32
    %480 = tpu.dynamic_rotate %436 by %c14_i32_189 dim 0 : vector<16x32xf32>, i32 -> vector<16x32xf32>
    %481 = vector.broadcast %344 : vector<16x1xf32> to vector<16x32xf32>
    %482 = arith.mulf %480, %481 : vector<16x32xf32>
    %483 = arith.mulf %433, %482 : vector<16x32xf32>
    %cst_190 = arith.constant dense<0.000000e+00> : vector<16xf32>
    %484 = vector.multi_reduction <add>, %483, %cst_190 [1] : vector<16x32xf32> to vector<16xf32>
    %485 = vector.shape_cast %484 : vector<16xf32> to vector<16x1xf32>
    %cst_191 = arith.constant 0.176776692 : f32
    %486 = vector.broadcast %cst_191 : f32 to vector<16x1xf32>
    %487 = arith.mulf %485, %486 : vector<16x1xf32>
    %cst_192 = arith.constant 9.99999543E-7 : f32
    %cst_193 = arith.constant -13.8155107 : f32
    %488 = vector.broadcast %cst_192 : f32 to vector<16x1xf32>
    %489 = vector.broadcast %cst_193 : f32 to vector<16x1xf32>
    %490 = arith.select %338, %488, %489 : vector<16x1xi1>, vector<16x1xf32>
    %491 = arith.addf %487, %490 : vector<16x1xf32>
    %c2_i32_194 = arith.constant 2 : i32
    %492 = vector.broadcast %c2_i32_194 : i32 to vector<1x3xi32>
    %493 = arith.cmpi eq, %39, %492 : vector<1x3xi32>
    %cst_195 = arith.constant 0.000000e+00 : f32
    %494 = vector.shape_cast %493 : vector<1x3xi1> to vector<1x3xi1>
    %495 = vector.broadcast %494 : vector<1x3xi1> to vector<16x3xi1>
    %496 = vector.shape_cast %491 : vector<16x1xf32> to vector<16x1xf32>
    %497 = vector.broadcast %496 : vector<16x1xf32> to vector<16x3xf32>
    %498 = vector.broadcast %cst_195 : f32 to vector<16x3xf32>
    %499 = arith.select %495, %497, %498 : vector<16x3xi1>, vector<16x3xf32>
    %500 = arith.addf %479, %499 : vector<16x3xf32>
    %cst_196 = arith.constant dense<0xFF800000> : vector<16xf32>
    %501 = vector.multi_reduction <maximumf>, %500, %cst_196 [1] : vector<16x3xf32> to vector<16xf32>
    %502 = vector.shape_cast %501 : vector<16xf32> to vector<16x1xf32>
    %503 = vector.broadcast %502 : vector<16x1xf32> to vector<16x3xf32>
    %504 = arith.subf %500, %503 : vector<16x3xf32>
    %505 = math.exp %504 : vector<16x3xf32>
    %cst_197 = arith.constant dense<0.000000e+00> : vector<16xf32>
    %506 = vector.multi_reduction <add>, %505, %cst_197 [1] : vector<16x3xf32> to vector<16xf32>
    %507 = vector.shape_cast %506 : vector<16xf32> to vector<16x1xf32>
    %508 = tpu.reciprocal %507 : vector<16x1xf32> -> vector<16x1xf32>
    %509 = vector.broadcast %508 : vector<16x1xf32> to vector<16x3xf32>
    %510 = arith.mulf %505, %509 : vector<16x3xf32>
    %cst_198 = arith.constant 0.000000e+00 : f32
    %511 = vector.broadcast %cst_198 : f32 to vector<16x32xf32>
    %c2_i32_199 = arith.constant 2 : i32
    %512 = tpu.dynamic_rotate %437 by %c2_i32_199 dim 0 : vector<16x32xf32>, i32 -> vector<16x32xf32>
    %513 = vector.broadcast %340 : vector<16x1xf32> to vector<16x32xf32>
    %514 = arith.mulf %512, %513 : vector<16x32xf32>
    %515 = vector.extract_strided_slice %510 {offsets = [0, 0], sizes = [16, 1], strides = [1, 1]} : vector<16x3xf32> to vector<16x1xf32>
    %516 = vector.broadcast %515 : vector<16x1xf32> to vector<16x32xf32>
    %517 = arith.mulf %516, %514 : vector<16x32xf32>
    %518 = arith.addf %511, %517 : vector<16x32xf32>
    %519 = vector.broadcast %342 : vector<16x1xf32> to vector<16x32xf32>
    %520 = arith.mulf %437, %519 : vector<16x32xf32>
    %521 = vector.extract_strided_slice %510 {offsets = [0, 1], sizes = [16, 1], strides = [1, 1]} : vector<16x3xf32> to vector<16x1xf32>
    %522 = vector.broadcast %521 : vector<16x1xf32> to vector<16x32xf32>
    %523 = arith.mulf %522, %520 : vector<16x32xf32>
    %524 = arith.addf %518, %523 : vector<16x32xf32>
    %c14_i32_200 = arith.constant 14 : i32
    %525 = tpu.dynamic_rotate %437 by %c14_i32_200 dim 0 : vector<16x32xf32>, i32 -> vector<16x32xf32>
    %526 = vector.broadcast %344 : vector<16x1xf32> to vector<16x32xf32>
    %527 = arith.mulf %525, %526 : vector<16x32xf32>
    %528 = vector.extract_strided_slice %510 {offsets = [0, 2], sizes = [16, 1], strides = [1, 1]} : vector<16x3xf32> to vector<16x1xf32>
    %529 = vector.broadcast %528 : vector<16x1xf32> to vector<16x32xf32>
    %530 = arith.mulf %529, %527 : vector<16x32xf32>
    %531 = arith.addf %524, %530 : vector<16x32xf32>
    %532 = arith.addf %419, %531 : vector<16x32xf32>
    %c1_201 = arith.constant 1 : index
    %c2_202 = arith.constant 2 : index
    %c0_203 = arith.constant 0 : index
    %533 = vector.load %arg4[%c1_201, %c2_202, %c0_203] : memref<2x3x32xf32, #tpu.memory_space<vmem>>, vector<1x1x32xf32>
    %534 = vector.shape_cast %533 : vector<1x1x32xf32> to vector<1x32xf32>
    %c1_204 = arith.constant 1 : index
    %c2_205 = arith.constant 2 : index
    %c0_206 = arith.constant 0 : index
    %535 = vector.load %arg5[%c1_204, %c2_205, %c0_206] : memref<2x3x32xf32, #tpu.memory_space<vmem>>, vector<1x1x32xf32>
    %536 = vector.shape_cast %535 : vector<1x1x32xf32> to vector<1x32xf32>
    %cst_207 = arith.constant dense<0.000000e+00> : vector<16xf32>
    %537 = vector.multi_reduction <add>, %532, %cst_207 [1] : vector<16x32xf32> to vector<16xf32>
    %538 = vector.shape_cast %537 : vector<16xf32> to vector<16x1xf32>
    %cst_208 = arith.constant 3.200000e+01 : f32
    %539 = vector.broadcast %cst_208 : f32 to vector<16x1xf32>
    %540 = arith.divf %538, %539 : vector<16x1xf32>
    %541 = vector.broadcast %540 : vector<16x1xf32> to vector<16x32xf32>
    %542 = arith.subf %532, %541 : vector<16x32xf32>
    %543 = arith.mulf %542, %542 : vector<16x32xf32>
    %cst_209 = arith.constant dense<0.000000e+00> : vector<16xf32>
    %544 = vector.multi_reduction <add>, %543, %cst_209 [1] : vector<16x32xf32> to vector<16xf32>
    %545 = vector.shape_cast %544 : vector<16xf32> to vector<16x1xf32>
    %cst_210 = arith.constant 3.200000e+01 : f32
    %546 = vector.broadcast %cst_210 : f32 to vector<16x1xf32>
    %547 = arith.divf %545, %546 : vector<16x1xf32>
    %548 = vector.broadcast %540 : vector<16x1xf32> to vector<16x32xf32>
    %549 = arith.subf %532, %548 : vector<16x32xf32>
    %cst_211 = arith.constant 9.99999974E-6 : f32
    %550 = vector.broadcast %cst_211 : f32 to vector<16x1xf32>
    %551 = arith.addf %547, %550 : vector<16x1xf32>
    %552 = math.rsqrt %551 : vector<16x1xf32>
    %553 = vector.broadcast %552 : vector<16x1xf32> to vector<16x32xf32>
    %554 = arith.mulf %549, %553 : vector<16x32xf32>
    %555 = vector.broadcast %534 : vector<1x32xf32> to vector<16x32xf32>
    %556 = arith.mulf %554, %555 : vector<16x32xf32>
    %557 = vector.broadcast %536 : vector<1x32xf32> to vector<16x32xf32>
    %558 = arith.addf %556, %557 : vector<16x32xf32>
    %559 = arith.truncf %558 : vector<16x32xf32> to vector<16x32xbf16>
    %c1_212 = arith.constant 1 : index
    %c0_213 = arith.constant 0 : index
    %c0_214 = arith.constant 0 : index
    %c0_215 = arith.constant 0 : index
    %560 = vector.load %arg11[%c1_212, %c0_213, %c0_214, %c0_215] : memref<2x2x32x32xbf16, #tpu.memory_space<vmem>>, vector<1x1x32x32xbf16>
    %561 = vector.shape_cast %560 : vector<1x1x32x32xbf16> to vector<32x32xbf16>
    %cst_216 = arith.constant dense<0.000000e+00> : vector<16x32xf32>
    %562 = tpu.matmul %559, %561, %cst_216 {dimension_numbers = #tpu.dot_dimension_numbers<[1], [0], [0], [1], [0, 0, 1, 1], [], []>} : vector<16x32xbf16>, vector<32x32xbf16>, vector<16x32xf32> -> vector<16x32xf32>
    %c1_217 = arith.constant 1 : index
    %c0_218 = arith.constant 0 : index
    %c0_219 = arith.constant 0 : index
    %563 = vector.load %arg12[%c1_217, %c0_218, %c0_219] : memref<2x2x32xf32, #tpu.memory_space<vmem>>, vector<1x1x32xf32>
    %564 = vector.shape_cast %563 : vector<1x1x32xf32> to vector<1x32xf32>
    %565 = vector.broadcast %564 : vector<1x32xf32> to vector<16x32xf32>
    %566 = arith.addf %562, %565 : vector<16x32xf32>
    %cst_220 = arith.constant 5.000000e-01 : f32
    %567 = vector.broadcast %cst_220 : f32 to vector<16x32xf32>
    %568 = arith.mulf %567, %566 : vector<16x32xf32>
    %cst_221 = arith.constant 0.707106769 : f32
    %569 = vector.broadcast %cst_221 : f32 to vector<16x32xf32>
    %570 = arith.mulf %566, %569 : vector<16x32xf32>
    %571 = math.erf %570 : vector<16x32xf32>
    %cst_222 = arith.constant 1.000000e+00 : f32
    %572 = vector.broadcast %cst_222 : f32 to vector<16x32xf32>
    %573 = arith.addf %572, %571 : vector<16x32xf32>
    %574 = arith.mulf %568, %573 : vector<16x32xf32>
    %575 = arith.truncf %574 : vector<16x32xf32> to vector<16x32xbf16>
    %c1_223 = arith.constant 1 : index
    %c1_224 = arith.constant 1 : index
    %c0_225 = arith.constant 0 : index
    %c0_226 = arith.constant 0 : index
    %576 = vector.load %arg11[%c1_223, %c1_224, %c0_225, %c0_226] : memref<2x2x32x32xbf16, #tpu.memory_space<vmem>>, vector<1x1x32x32xbf16>
    %577 = vector.shape_cast %576 : vector<1x1x32x32xbf16> to vector<32x32xbf16>
    %cst_227 = arith.constant dense<0.000000e+00> : vector<16x32xf32>
    %578 = tpu.matmul %575, %577, %cst_227 {dimension_numbers = #tpu.dot_dimension_numbers<[1], [0], [0], [1], [0, 0, 1, 1], [], []>} : vector<16x32xbf16>, vector<32x32xbf16>, vector<16x32xf32> -> vector<16x32xf32>
    %c1_228 = arith.constant 1 : index
    %c1_229 = arith.constant 1 : index
    %c0_230 = arith.constant 0 : index
    %579 = vector.load %arg12[%c1_228, %c1_229, %c0_230] : memref<2x2x32xf32, #tpu.memory_space<vmem>>, vector<1x1x32xf32>
    %580 = vector.shape_cast %579 : vector<1x1x32xf32> to vector<1x32xf32>
    %581 = vector.broadcast %580 : vector<1x32xf32> to vector<16x32xf32>
    %582 = arith.addf %578, %581 : vector<16x32xf32>
    %583 = arith.addf %311, %582 : vector<16x32xf32>
    %584 = tpu.transpose %583, [1, 0] : vector<16x32xf32> -> vector<32x16xf32>
    %c0_231 = arith.constant 0 : index
    %c0_232 = arith.constant 0 : index
    %c0_233 = arith.constant 0 : index
    %585 = vector.load %arg15[%c0_231, %c0_232, %c0_233] : memref<1x32x16xf32, #tpu.memory_space<vmem>>, vector<1x32x16xf32>
    %586 = vector.shape_cast %585 : vector<1x32x16xf32> to vector<32x16xf32>
    %587 = vector.shape_cast %584 : vector<32x16xf32> to vector<1x32x16xf32>
    tpu.vector_store %arg15[%c0_231, %c0_232, %c0_233], %587 {strides = array<i32>} : memref<1x32x16xf32, #tpu.memory_space<vmem>>, vector<1x32x16xf32>,
    return
  }
  func.func @transform_0(%arg0: i32) -> (i32, i32, i32) {
    %c0_i32 = arith.constant 0 : i32
    %c0_i32_0 = arith.constant 0 : i32
    %c0_i32_1 = arith.constant 0 : i32
    return %arg0, %c0_i32, %c0_i32_0 : i32, i32, i32
  }
  func.func @transform_1(%arg0: i32) -> (i32, i32, i32) {
    %c0_i32 = arith.constant 0 : i32
    %c0_i32_0 = arith.constant 0 : i32
    %c0_i32_1 = arith.constant 0 : i32
    return %arg0, %c0_i32, %c0_i32_0 : i32, i32, i32
  }
  func.func @transform_2(%arg0: i32) -> (i32, i32, i32) {
    %c0_i32 = arith.constant 0 : i32
    %c0_i32_0 = arith.constant 0 : i32
    %c0_i32_1 = arith.constant 0 : i32
    return %arg0, %c0_i32, %c0_i32_0 : i32, i32, i32
  }
  func.func @transform_3(%arg0: i32) -> (i32, i32, i32) {
    %c0_i32 = arith.constant 0 : i32
    %c0_i32_0 = arith.constant 0 : i32
    %c0_i32_1 = arith.constant 0 : i32
    %c0_i32_2 = arith.constant 0 : i32
    return %c0_i32, %c0_i32_0, %c0_i32_1 : i32, i32, i32
  }
  func.func @transform_4(%arg0: i32) -> (i32, i32, i32) {
    %c0_i32 = arith.constant 0 : i32
    %c0_i32_0 = arith.constant 0 : i32
    %c0_i32_1 = arith.constant 0 : i32
    %c0_i32_2 = arith.constant 0 : i32
    return %c0_i32, %c0_i32_0, %c0_i32_1 : i32, i32, i32
  }
  func.func @transform_5(%arg0: i32) -> (i32, i32, i32) {
    %c0_i32 = arith.constant 0 : i32
    %c0_i32_0 = arith.constant 0 : i32
    %c0_i32_1 = arith.constant 0 : i32
    %c0_i32_2 = arith.constant 0 : i32
    return %c0_i32, %c0_i32_0, %c0_i32_1 : i32, i32, i32
  }
  func.func @transform_6(%arg0: i32) -> (i32, i32, i32) {
    %c0_i32 = arith.constant 0 : i32
    %c0_i32_0 = arith.constant 0 : i32
    %c0_i32_1 = arith.constant 0 : i32
    %c0_i32_2 = arith.constant 0 : i32
    return %c0_i32, %c0_i32_0, %c0_i32_1 : i32, i32, i32
  }
  func.func @transform_7(%arg0: i32) -> (i32, i32, i32) {
    %c0_i32 = arith.constant 0 : i32
    %c0_i32_0 = arith.constant 0 : i32
    %c0_i32_1 = arith.constant 0 : i32
    %c0_i32_2 = arith.constant 0 : i32
    return %c0_i32, %c0_i32_0, %c0_i32_1 : i32, i32, i32
  }
  func.func @transform_8(%arg0: i32) -> (i32, i32, i32) {
    %c0_i32 = arith.constant 0 : i32
    %c0_i32_0 = arith.constant 0 : i32
    %c0_i32_1 = arith.constant 0 : i32
    %c0_i32_2 = arith.constant 0 : i32
    return %c0_i32, %c0_i32_0, %c0_i32_1 : i32, i32, i32
  }
  func.func @transform_9(%arg0: i32) -> (i32, i32, i32) {
    %c0_i32 = arith.constant 0 : i32
    %c0_i32_0 = arith.constant 0 : i32
    %c0_i32_1 = arith.constant 0 : i32
    %c0_i32_2 = arith.constant 0 : i32
    return %c0_i32, %c0_i32_0, %c0_i32_1 : i32, i32, i32
  }
  func.func @transform_10(%arg0: i32) -> (i32, i32, i32, i32) {
    %c0_i32 = arith.constant 0 : i32
    %c0_i32_0 = arith.constant 0 : i32
    %c0_i32_1 = arith.constant 0 : i32
    %c0_i32_2 = arith.constant 0 : i32
    %c0_i32_3 = arith.constant 0 : i32
    return %c0_i32, %c0_i32_0, %c0_i32_1, %c0_i32_2 : i32, i32, i32, i32
  }
  func.func @transform_11(%arg0: i32) -> (i32, i32, i32) {
    %c0_i32 = arith.constant 0 : i32
    %c0_i32_0 = arith.constant 0 : i32
    %c0_i32_1 = arith.constant 0 : i32
    %c0_i32_2 = arith.constant 0 : i32
    return %c0_i32, %c0_i32_0, %c0_i32_1 : i32, i32, i32
  }
  func.func @transform_12(%arg0: i32) -> (i32, i32) {
    %c0_i32 = arith.constant 0 : i32
    %c0_i32_0 = arith.constant 0 : i32
    %c0_i32_1 = arith.constant 0 : i32
    return %c0_i32, %c0_i32_0 : i32, i32
  }
  func.func @transform_13(%arg0: i32) -> (i32, i32) {
    %c0_i32 = arith.constant 0 : i32
    %c0_i32_0 = arith.constant 0 : i32
    %c0_i32_1 = arith.constant 0 : i32
    return %c0_i32, %c0_i32_0 : i32, i32
  }
  func.func @transform_14(%arg0: i32) -> (i32, i32, i32) {
    %c0_i32 = arith.constant 0 : i32
    %c0_i32_0 = arith.constant 0 : i32
    %c0_i32_1 = arith.constant 0 : i32
    return %arg0, %c0_i32, %c0_i32_0 : i32, i32, i32
  }
}

</mosaic_0001>

<bundles_post_ra>
// kernel: tpu_custom_call.1
= control target key start
LH: loop header
LB: loop body
LE: loop exit
PB: predicated region body
PF: predicated region fallthrough
CT: control target
= control target key end

     0   :  { %s3314_s0 = inlined_call_operand.vmem [shape: f32[2,32,16], index: 0, kind: input, shape index: {}]   ;;  %s3315_s1 = inlined_call_operand.vmem [shape: f32[2,16,16], index: 1, kind: input, shape index: {}]   ;;  %s3316_s2 = inlined_call_operand.vmem [shape: f32[2,1,8], index: 2, kind: input, shape index: {}]   ;;  %s3317_s3 = inlined_call_operand.vmem [shape: f32[2,3,32], index: 3, kind: input, shape index: {}]   ;;  %s3318_s4 = inlined_call_operand.vmem [shape: f32[2,3,32], index: 4, kind: input, shape index: {}]   ;;  %s3319_s5 = inlined_call_operand.vmem [shape: bf16[2,32,96], index: 5, kind: input, shape index: {}]   ;;  %s3320_s6 = inlined_call_operand.hbm [shape: f32[2,1,32], index: 6, kind: input, shape index: {}]   ;;  %s3321_s7 = inlined_call_operand.hbm [shape: bf16[2,32,96], index: 7, kind: input, shape index: {}]   ;;  %s3322_s8 = inlined_call_operand.hbm [shape: f32[2,1,96], index: 8, kind: input, shape index: {}]   ;;  %s3323_s9 = inlined_call_operand.vmem [shape: bf16[2,16,64], index: 9, kind: input, shape index: {}]   ;;  %s3324_s10 = inlined_call_operand.vmem [shape: bf16[2,2,32,32], index: 10, kind: input, shape index: {}]   ;;  %s3325_s11 = inlined_call_operand.vmem [shape: f32[2,2,32], index: 11, kind: input, shape index: {}]   ;;  %s3326_s12 = inlined_call_operand.vmem [shape: bf16[8,32], index: 12, kind: input, shape index: {}]   ;;  %s3327_s13 = inlined_call_operand.vmem [shape: f32[1,32], index: 13, kind: input, shape index: {}]   ;;  %s3328_s14 = inlined_call_operand.vmem [shape: f32[2,32,16], index: 14, kind: output, shape index: {}]  }
   0x1   :  { %3333 = sst [smem:[#allocation10_spill]] %s3325_s11 }
   0x2   :  { %3334 = sst [smem:[#allocation11_spill]] %s3328_s14 }
   0x3   :  { %19 = vsyncpa [#allocation3], 0 }
   0x4   :  { %20 = vsyncpa [#allocation5], 0  ;;  %s2748_s29 = smov 0  }
   0x5 LB: > { %3335 = sst [smem:[#allocation9_spill]] %s2656_s29  ;;  %s2658_s30 = smov [#allocation4]   ;;  %s2656_s29 = sphi %s2748_s29, %s26_s29  }
   0x6   : > { %s400_s15 = sshll.u32 %s2658_s30, 4  ;;  %s2754_s16 = sadd.s32 4294967295, %s2656_s29   ;;  %s2763_s15 = int_to_ptr.vmem [resolvable:$true] %s400_s15 }
   0x7   : > { %p2222_p0 = scmp.ge.s32.totalorder %s2656_s29, 1  ;;  %p366_p1 = scmp.lt.s32.totalorder %s2656_s29, 3 }
   0x8   : > { %p3331_p2 = scmp.eq.s32.totalorder %s2754_s16, 0  ;;  %s2659_s18 = smov [#allocation2]  }
   0x9   : > { %p2759_p3 = pnand %p2222_p0, %p366_p1  ;;  %s387_s19 = sshll.u32 %s2659_s18, 4  ;;  %s2767_s19 = int_to_ptr.vmem [resolvable:$true] %s387_s19 }
   0xa   : > { %s2660_s21 = smov [#allocation6]   ;;  %s2558_s25 = scalar_lea.hbm %s3321_s7, 512 }
   0xb   : > { %s3336_s17 = scalar_select %p2759_p3, 1, 0 }
   0xc   : > { %p2446_p4 = pneg %p2759_p3  ;;  %s2775_s22 = sshll.u32 %s2660_s21, 4  ;;  %s414_s22 = int_to_ptr.vmem [resolvable:$true] %s2775_s22 }
   0xd   : > { %p2559_p6 = scmp.ne.s32.totalorder %s3321_s7, %s2558_s25  ;;  %p2565_p10 = scmp.lt.u32.totalorder %s2558_s25, %s3321_s7 }
   0xe   : > { %p2771_p5 = pnand %p3331_p2, %p2446_p4 }
  0x10   : > { %p2785_p7 = pneg %p2771_p5 }
  0x12   : > { %p2561_p8 = pnand %p2785_p7, %p2559_p6 }
  0x14   : > { %p2562_p9 = pneg %p2561_p8 }
  0x16   : > { %p2567_p11 = pnand %p2565_p10, %p2562_p9 }
  0x18   : > { %2570 = shalt.err (!%p2567_p11)
}
  0x19   : > { %s2571_s21 = scalar_lea.vmem %s2763_s15, 512  ;;  %p2579_p1 = scmp.lt.s32.totalorder %s2763_s15, %s2763_s15 }
  0x1a   : > { %p2572_p12 = scmp.ne.s32.totalorder %s2763_s15, %s2571_s21  ;;  %p2580_p4 = scmp.lt.s32.totalorder %s2571_s21, %s2571_s21 }
  0x1c   : > { %p2574_p13 = pnand %p2572_p12, %p2785_p7  ;;  %p2581_p6 = por %p2580_p4, %p2579_p1 }
  0x1e   : > { %p2575_p0 = pneg %p2574_p13 }
  0x20   : > { %p2582_p8 = pnand %p2581_p6, %p2575_p0 }
  0x22   : > { %2585 = shalt.err (!%p2582_p8)
}
  0x23   : > { %s2661_s23 = smov 64   ;;  %s2662_s24 = smov 4  }
  0x24   : > { %2452 = dma.hbm_to_vmem [thread:$0]  (!%p2771_p5), %s3321_s7, 512, %s2763_s15, [#allocation5], %s2661_s23, %s2661_s23, %s2662_s24  }
  0x25   : > { %s2586_s18 = scalar_lea.hbm %s3320_s6, 32 }
  0x26   : > { %p2587_p9 = scmp.ne.s32.totalorder %s3320_s6, %s2586_s18  ;;  %p2593_p12 = scmp.lt.u32.totalorder %s2586_s18, %s3320_s6 }
  0x28   : > { %p2589_p10 = pnand %p2587_p9, %p2785_p7 }
  0x2a   : > { %p2590_p11 = pneg %p2589_p10 }
  0x2c   : > { %p2595_p13 = pnand %p2593_p12, %p2590_p11 }
  0x2e   : > { %2598 = shalt.err (!%p2595_p13)
}
  0x2f   : > { %s2599_s15 = scalar_lea.vmem %s2767_s19, 32  ;;  %p2607_p6 = scmp.lt.s32.totalorder %s2767_s19, %s2767_s19 }
  0x30   : > { %p2600_p0 = scmp.ne.s32.totalorder %s2767_s19, %s2599_s15  ;;  %p2608_p8 = scmp.lt.s32.totalorder %s2599_s15, %s2599_s15 }
  0x32   : > { %p2602_p1 = pnand %p2600_p0, %p2785_p7  ;;  %p2609_p9 = por %p2608_p8, %p2607_p6 }
  0x34   : > { %p2603_p4 = pneg %p2602_p1 }
  0x36   : > { %p2610_p10 = pnand %p2609_p9, %p2603_p4 }
  0x38   : > { %2613 = shalt.err (!%p2610_p10)
}
  0x39   : > { %s2663_s14 = smov 16   ;;  %s2664_s11 = smov 1  }
  0x3a   : > { %2449 = dma.hbm_to_vmem [thread:$0]  (!%p2771_p5), %s3320_s6, 32, %s2767_s19, [#allocation3], %s2663_s14, %s2663_s14, %s2664_s11  }
  0x3b   : > { %s2614_s26 = scalar_lea.hbm %s3322_s8, 32 }
  0x3c   : > { %p2615_p11 = scmp.ne.s32.totalorder %s3322_s8, %s2614_s26  ;;  %p2621_p0 = scmp.lt.u32.totalorder %s2614_s26, %s3322_s8 }
  0x3e   : > { %p2617_p12 = pnand %p2615_p11, %p2785_p7 }
  0x40   : > { %p2618_p13 = pneg %p2617_p12 }
  0x42   : > { %p2623_p1 = pnand %p2621_p0, %p2618_p13 }
  0x44   : > { %2626 = shalt.err (!%p2623_p1)
}
  0x45   : > { %s2627_s15 = scalar_lea.vmem %s414_s22, 32  ;;  %p2635_p9 = scmp.lt.s32.totalorder %s414_s22, %s414_s22 }
  0x46   : > { %p2628_p4 = scmp.ne.s32.totalorder %s414_s22, %s2627_s15  ;;  %p2636_p10 = scmp.lt.s32.totalorder %s2627_s15, %s2627_s15 }
  0x48   : > { %p2630_p6 = pnand %p2628_p4, %p2785_p7  ;;  %p2637_p2 = por %p2636_p10, %p2635_p9 }
  0x4a   : > { %p2631_p8 = pneg %p2630_p6 }
  0x4c   : > { %p2638_p3 = pnand %p2637_p2, %p2631_p8 }
  0x4e   : > { %2641 = shalt.err (!%p2638_p3)
}
  0x4f   : > { %2455 = dma.hbm_to_vmem [thread:$0]  (!%p2771_p5), %s3322_s8, 32, %s414_s22, [#allocation5], %s2663_s14, %s2663_s14, %s2664_s11  }
  0x50   : > { %p3339_p11 = scmp.ne.s32.totalorder %s3336_s17, 0 }
  0x51   : > { %p3340_p12 = scmp.eq.s32.totalorder (!%p3339_p11), %s2754_s16, 0 }
  0x52   : > { %466 = sbr.rel (%p3339_p11) target bundleno = 4803 (0x12c3), region = 76 }
  0x59   : > { %2647 = dma.done.wait (%p3340_p12), [#allocation3], 32   ;;  %p3341_p7 = pmov %p3340_p12 }
  0x5b   : > { %2649 = vsyncadd (%p3341_p7), [#allocation3], 4294967264  ;;  %p3342_p13 = pmov %p3341_p7 }
  0x5c   : > { %p3343_p2 = pmov %p3341_p7 }
  0x5d   : > { %2651 = dma.done.wait (%p3342_p13), [#allocation5], 544  }
  0x5e   : > { %2653 = vsyncadd (%p3343_p2), [#allocation5], 4294966752  ;;  %p528_p3 = scmp.lt.s32.totalorder %s2754_s16, 1  ;;  %v2665_v0 = vmov 0.0   ;;  %vm2666_vm0 = vmmov 0   ;;  %vm600_vm1 = vcmask 1043456   ;;  %v644_v14 = vlaneseq }
  0x5f   : > { %2352 = vmatprep.subr.bf16.mxu0 %v2665_v0  ;;  %2354 = vmatprep.mubr.msk.bf16.mxu0 %vm2666_vm0, %v2665_v0  ;;  %v594_v1 = vld [vmem:[%s3326_s12] sm:$0xf]  ;;  %vm596_vm2 = vcmask 64512   ;;  %vm748_vm3 = vcmask 261120   ;;  %v2498_v44 = vld [vmem:[%s3319_s5 + $0x8] sm:$0xff]   ;;  %vm986_vm4 = vcmask 130048  }
  0x60   : > { %s3348_s16 = smov (!%p528_p3, %s2754_s16), 1  ;;  %2358 = vmatprep.subr.bf16.mxu1 %v2665_v0  ;;  %2362 = vmatprep.mubr.msk.bf16.mxu1 %vm2666_vm0, %v2665_v0  ;;  %v602_v4 = vsel %vm600_vm1, %v594_v1, 0  ;;  %v2885_v15 = vshrl.u32 %v644_v14, 7  ;;  %v595_v16 = vld [vmem:[%s3327_s13] sm:$0x1]  ;;  %v2497_v43 = vld [vmem:[#allocation4] sm:$0xff]  }
  0x61   : > { %s540_s22 = scalar_lea.vmem %s3316_s2, %s3348_s16  ;;  %s2319_s28 = sshll.u32 %s3348_s16, 5  ;;  %2353 = vmatpush3.bf16.msra.mxu0 %v602_v4  ;;  %v2496_v42 = vld [vmem:[%s3319_s5] sm:$0xff]   ;;  %v2499_v45 = vld [vmem:[#allocation4 + $0x8] sm:$0xff]   ;;  %vm1126_vm12 = vcmask 23552  }
  0x62   : > { %s532_s23 = scalar_lea.vmem %s3314_s0, %s2319_s28  ;;  %v553_v2 = vld [vmem:[%s540_s22] sm:$0x1]  ;;  %2366 = vmatprep.subr.bf16.mxu0 %v2665_v0  ;;  %v646_v18 = vsub.s32 0, %v2885_v15  ;;  %s2320_s30 = sshll.u32 %s3348_s16, 4  ;;  %2359 = vmatpush3.bf16.msra.mxu1 %v2496_v42  ;;  %v2243_v54 = vld [vmem:[%s3317_s3 + $0x1] ss:$0 sm:$0xff] }
  0x63   : > { %v547_v3 = vld [vmem:[%s532_s23] sm:$0xff]  ;;  %v2237_v5 = vmul.f32 -1.442695, %v553_v2  ;;  %v548_v6 = vld [vmem:[%s532_s23 + $0x8] sm:$0xff]  ;;  %v549_v7 = vld [vmem:[%s532_s23 + $0x10] sm:$0xff]  ;;  %s537_s15 = scalar_lea.vmem %s3315_s1, %s2320_s30  ;;  %2360 = vmatprep.subr.bf16.mxu1 %v2665_v0  ;;  %vm865_vm5 = vcmp.lt.s32.totalorder %v2885_v15, 1 }
  0x64   : > { %561 = vxpose.xlu0.b32.start [1/4] (short) (narrow) %v547_v3, 16  ;;  %v550_v8 = vld [vmem:[%s532_s23 + $0x18] sm:$0xff]  ;;  %v551_v30 = vld [vmem:[%s537_s15] sm:$0xff]  ;;  %v552_v31 = vld [vmem:[%s537_s15 + $0x8] sm:$0xff]  ;;  %s2667_s21 = smov 96   ;;  %vm894_vm6 = vcmp.lt.s32.totalorder %v2885_v15, 7 }
  0x65   : > { %2514 = vpow2.f32 %v2237_v5  ;;  %v2241_v55 = vld [vmem:[%s3317_s3] ss:$0 sm:$0xff]  ;;  %v2244_v61 = vld [vmem:[%s3318_s4 + $0x1] ss:$0 sm:$0xff]  ;;  %s2671_s15 = smov 64   ;;  %s3344_s19 = sld [smem:[#allocation10_spill]] }
  0x66   : > { %2361 = vmatpush3.bf16.msra.mxu1 %v2498_v44  ;;  %v2242_v60 = vld [vmem:[%s3318_s4] ss:$0 sm:$0xff]  ;;  %vm1548_vm13 = vcmp.lt.s32.totalorder %v2885_v15, 2  ;;  %vm1577_vm14 = vcmp.lt.s32.totalorder %v2885_v15, 6  ;;  %s3345_s14 = sld [smem:[#allocation11_spill]] }
  0x67   : > { %2374 = vmatprep.subr.bf16.mxu1 %v2665_v0 }
  0x68   : > { %562 = vxpose.xlu0.b32.cont [2/4] (short) (narrow) %v548_v6, 16  ;;  %v2500_v6 = vld [vmem:[%s3323_s9] sm:$0xff]  }
  0x6c   : > { %563 = vxpose.xlu0.b32.cont [3/4] (short) (narrow) %v549_v7, 16  ;;  %s545_s11 = scalar_lea.vmem %s3345_s14, %s2319_s28 }
  0x6f   : > { %v2515_v9 = vpop.eup %2514 }
  0x70   : > { %564 = vxpose.xlu0.b32.end [4/4] (short) (narrow) %v550_v8, 16  ;;  %v557_v10 = vadd.f32 1.0, %v2515_v9 }
  0x72   : > { %2516 = vrcp.f32 %v557_v10 }
  0x74   : > { %650 = vxpose.xlu0.b32.start [1/2] (short) (narrow) %v551_v30, 16 }
  0x78   : > { %651 = vxpose.xlu0.b32.end [2/2] (short) (narrow) %v552_v31, 16 }
  0x7c   : > { %v2517_v11 = vpop.eup %2516 }
  0x7d   : > { %v560_v12 = vmul.f32 %v2517_v11, %v553_v2 }
  0x7f   : > { %v593_v13 = vpack.c.bf16 %v560_v12, %v560_v12 }
  0x81   : > { %2355 = vmatmul.mubr.msk.bf16.vlgmr.msra.gmra.mrb[0].mxu0 %vm596_vm2, %v593_v13 }
  0x82   : > { %2370 = vmatprep.mubr.msk.bf16.mxu0 %vm2666_vm0, %v2665_v0  ;;  %2367 = vmatpush3.bf16.msra.mxu0 %v2497_v43 }
  0x83   : > { %2368 = vmatprep.subr.bf16.mxu0 %v2665_v0 }
  0x86   : > { %2369 = vmatpush3.bf16.msra.mxu0 %v2499_v45 }
  0x87   : > { %2380 = vmatprep.subr.bf16.mxu0 %v2665_v0 }
  0xe4   : > { %v577_v17 = vpop.trf.xlu0 }
  0xe8   : > { %v578_v25 = vpop.trf.xlu0 }
  0xf4   : > { %v666_v5 = vpop.trf.xlu0 }
  0xf8   : > { %v667_v9 = vpop.trf.xlu0 }
  0xf9   : > { %v2939_v10 = vpack.c.bf16 %v667_v9, %v666_v5 }
 0x154   : > { %v638_v19 = vpop.f32.mrb[0].mxu0 }
 0x155   : > { %v639_v20 = vadd.f32 %v638_v19, %v595_v16  ;;  %v2356_v21 = vpop.f32.mrb[1].mxu0 }
 0x156   : > { %v641_v22 = vpop.f32.mrb[2].mxu0 }
 0x157   : > { %v647_v23 = vrot.slane %v639_v20, %v646_v18  ;;  %v2357_v24 = vpop.f32.mrb[3].mxu0 }
 0x159   : > { %v2891_v26 = vadd.f32 %v647_v23, %v577_v17  ;;  %v2893_v27 = vadd.f32 %v647_v23, %v578_v25  ;;  %v2249_v23 = vld [vmem:[#allocation6] ss:$0 sm:$0xff] }
 0x15b   : > { %v749_v28 = vsel %vm748_vm3, %v2891_v26, 0.0  ;;  %v752_v29 = vsel %vm748_vm3, %v2893_v27, 0.0 }
 0x15c   : > { %750 = vadd.xlane.f32.xlu1 %v749_v28 }
 0x160   : > { %753 = vadd.xlane.f32.xlu1 %v752_v29 }
 0x1e9   : > { %v751_v32 = vpop.xlane.xlu1 %750 }
 0x1ea   : > { %v756_v33 = vmul.f32 0.03125, %v751_v32 }
 0x1ec   : > { %v758_v34 = vsub.f32 %v2891_v26, %v756_v33 }
 0x1ed   : > { %v754_v35 = vpop.xlane.xlu1 %753 }
 0x1ee   : > { %v757_v36 = vmul.f32 0.03125, %v754_v35  ;;  %v760_v37 = vmul.f32 %v758_v34, %v758_v34 }
 0x1f0   : > { %v759_v38 = vsub.f32 %v2893_v27, %v757_v36  ;;  %v762_v39 = vsel %vm748_vm3, %v760_v37, 0.0  ;;  %v2971_v36 = vadd.s32 8, %v2885_v15  ;;  %v690_v37 = vand.u32 15, %v2885_v15 }
 0x1f1   : > { %763 = vadd.xlane.f32.xlu1 %v762_v39 }
 0x1f2   : > { %v761_v40 = vmul.f32 %v759_v38, %v759_v38  ;;  %v697_v39 = vand.u32 15, %v2971_v36  ;;  %v712_v43 = vadd.s32 4294967295, %v690_v37 }
 0x1f4   : > { %v765_v41 = vsel %vm748_vm3, %v761_v40, 0.0  ;;  %vm714_vm7 = vcmp.ge.s32.totalorder %v712_v43, 0 }
 0x1f5   : > { %766 = vadd.xlane.f32.xlu1 %v765_v41 }
 0x27e   : > { %v764_v46 = vpop.xlane.xlu1 %763 }
 0x27f   : > { %v768_v47 = vmul.f32 0.03125, %v764_v46 }
 0x281   : > { %v770_v48 = vadd.f32 1e-05, %v768_v47 }
 0x282   : > { %v767_v49 = vpop.xlane.xlu1 %766 }
 0x283   : > { %2518 = vrsqrt.f32 %v770_v48  ;;  %v769_v50 = vmul.f32 0.03125, %v767_v49  ;;  %v727_v48 = vadd.s32 1, %v697_v39 }
 0x285   : > { %v771_v51 = vadd.f32 1e-05, %v769_v50  ;;  %vm731_vm8 = vcmp.lt.s32.totalorder %v727_v48, 16 }
 0x287   : > { %2520 = vrsqrt.f32 %v771_v51 }
 0x28d   : > { %v2519_v52 = vpop.eup %2518 }
 0x28e   : > { %v774_v53 = vmul.f32 %v2519_v52, %v758_v34 }
 0x290   : > { %v794_v57 = vmul.f32 %v2243_v54, %v774_v53  ;;  %v780_v59 = vmul.f32 %v2241_v55, %v774_v53 }
 0x291   : > { %v2521_v56 = vpop.eup %2520 }
 0x292   : > { %v775_v58 = vmul.f32 %v2521_v56, %v759_v38  ;;  %v786_v1 = vadd.f32 %v2242_v60, %v780_v59  ;;  %v800_v3 = vadd.f32 %v2244_v61, %v794_v57  ;;  %v2990_v57 = vsel %vm714_vm7, 1.0, %v2665_v0 }
 0x294   : > { %v795_v62 = vmul.f32 %v2243_v54, %v775_v58  ;;  %v781_v63 = vmul.f32 %v2241_v55, %v775_v58 }
 0x296   : > { %v787_v2 = vadd.f32 %v2242_v60, %v781_v63  ;;  %v801_v4 = vadd.f32 %v2244_v61, %v795_v62  ;;  %v2996_v61 = vsel %vm731_vm8, 1.0, %v2665_v0 }
 0x298   : > { %v802_v7 = vpack.c.bf16 %v787_v2, %v786_v1  ;;  %v910_v8 = vpack.c.bf16 %v801_v4, %v800_v3 }
 0x29a   : > { %2363 = vmatmul.mubr.msk.bf16.vlgmr.msra.gmra.mrb[0].mxu1 %vm748_vm3, %v802_v7  ;;  %2371 = vmatmul.mubr.msk.bf16.vlgmr.msra.gmra.mrb[4].mxu0 %vm748_vm3, %v910_v8 }
 0x29b   : > { %2375 = vmatpush3.bf16.msra.mxu1 %v2500_v6  ;;  %2376 = vmatprep.mubr.msk.bf16.mxu1 %vm2666_vm0, %v2665_v0 }
 0x29c   : > { %2384 = vmatprep.mubr.msk.bf16.mxu0 %vm2666_vm0, %v2665_v0  ;;  %2388 = vmatprep.subr.bf16.mxu1 %v2665_v0 }
 0x2a2   : > { %2377 = vmatmul.mubr.msk.bf16.vlgmr.msra.gmra.mrb[4].mxu1 %vm986_vm4, %v2939_v10 }
 0x2a3   : > { %2392 = vmatprep.mubr.msk.bf16.mxu1 %vm2666_vm0, %v2665_v0 }
 0x36d   : > { %v2945_v11 = vpop.f32.mrb[0].mxu1  ;;  %v971_v12 = vpop.f32.mrb[4].mxu0 }
 0x36e   : > { %v2364_v13 = vpop.f32.mrb[1].mxu1  ;;  %v2372_v16 = vpop.f32.mrb[5].mxu0  ;;  %v863_v19 = vrot.slane %v2945_v11, 7  ;;  %v2960_v28 = vadd.f32 %v2249_v23, %v971_v12 }
 0x36f   : > { %v2947_v17 = vpop.f32.mrb[2].mxu1  ;;  %v974_v18 = vpop.f32.mrb[6].mxu0  ;;  %v3005_v16 = vand.u32 127, %v644_v14 }
 0x370   : > { %v864_v20 = vrot.slane %v2947_v17, 7  ;;  %v2365_v21 = vpop.f32.mrb[3].mxu1  ;;  %v2373_v22 = vpop.f32.mrb[7].mxu0  ;;  %v2962_v30 = vadd.f32 %v2249_v23, %v974_v18 }
 0x371   : > { %vm1092_vm9 = vcmp.eq.s32.totalorder %v3005_v16, 1  ;;  %vm1061_vm10 = vcmp.eq.s32.totalorder %v3005_v16, 0  ;;  %vm1119_vm11 = vcmp.eq.s32.totalorder %v3005_v16, 2 }
 0x372   : > { %v2954_v24 = vsel %vm865_vm5, %v864_v20, %v863_v19  ;;  %v2958_v25 = vsel %vm865_vm5, %v863_v19, %v864_v20  ;;  %v2668_v20 = vmov -13.815511  }
 0x373   : > { %v1057_v21 = vsel %vm714_vm7, 9.999995e-07, %v2668_v20  ;;  %v1116_v14 = vsel %vm731_vm8, 9.999995e-07, %v2668_v20 }
 0x375   : > { %v1024_v29 = vpop.f32.mrb[4].mxu1 }
 0x376   : > { %v1031_v31 = vadd.f32 %v1024_v29, %v2960_v28  ;;  %v2378_v32 = vpop.f32.mrb[5].mxu1 }
 0x377   : > { %v1027_v33 = vpop.f32.mrb[6].mxu1 }
 0x378   : > { %v1032_v34 = vadd.f32 %v1027_v33, %v2962_v30  ;;  %1035 = vrot.lane.b32.xlu1 %v1031_v31, %s2667_s21  ;;  %v2379_v35 = vpop.f32.mrb[7].mxu1 }
 0x37a   : > { %1037 = vrot.lane.b32.xlu0 %v1032_v34, %s2667_s21 }
 0x37c   : > { %1072 = vrot.lane.b32.xlu1 %v1031_v31, %s2667_s21 }
 0x380   : > { %1074 = vrot.lane.b32.xlu1 %v1032_v34, %s2667_s21 }
 0x3ea   : > { %v1036_v38 = vpop.permute.xlu1 %1035 }
 0x3eb   : > { %v1041_v41 = vrot.slane %v1036_v38, 7  ;;  %v1099_v49 = vrot.slane %v1036_v38, 1 }
 0x3ec   : > { %v1038_v40 = vpop.permute.xlu0 %1037 }
 0x3ed   : > { %v1042_v42 = vrot.slane %v1038_v40, 7  ;;  %v1100_v44 = vrot.slane %v1038_v40, 1 }
 0x3ee   : > { %v1073_v45 = vpop.permute.xlu1 %1072 }
 0x3ef   : > { %v1078_v46 = vmul.f32 %v1073_v45, %v1031_v31  ;;  %v1043_v47 = vsel %vm865_vm5, %v1041_v41, %v1042_v42  ;;  %v1101_v54 = vsel %vm894_vm6, %v1099_v49, %v1100_v44  ;;  %v1044_v55 = vsel %vm865_vm5, %v1042_v42, %v1041_v41 }
 0x3f0   : > { %v1048_v50 = vmul.f32 %v1043_v47, %v1032_v34  ;;  %v1105_v59 = vmul.f32 %v1101_v54, %v1031_v31  ;;  %v1045_v60 = vmul.f32 %v2990_v57, %v1044_v55  ;;  %v1102_v62 = vsel %vm894_vm6, %v1100_v44, %v1099_v49 }
 0x3f1   : > { %v1080_v51 = vsel %vm748_vm3, %v1078_v46, 0.0  ;;  %v1104_v2 = vmul.f32 %v2996_v61, %v1102_v62 }
 0x3f2   : > { %1081 = vadd.xlane.f32.xlu1 %v1080_v51  ;;  %v1075_v52 = vpop.permute.xlu1 %1074  ;;  %v1052_v53 = vsel %vm748_vm3, %v1048_v50, 0.0  ;;  %v1107_v63 = vsel %vm748_vm3, %v1105_v59, 0.0  ;;  %v1047_v1 = vmul.f32 %v1045_v60, %v1031_v31 }
 0x3f3   : > { %v1079_v56 = vmul.f32 %v1075_v52, %v1032_v34  ;;  %1053 = vadd.xlane.f32.xlu0 %v1052_v53  ;;  %v1106_v4 = vmul.f32 %v1104_v2, %v1032_v34  ;;  %v2669_v2 = vmov 1  }
 0x3f4   : > { %v1049_v3 = vsel %vm748_vm3, %v1047_v1, 0.0  ;;  %2485 = vset.pattern.permute.xlu1 %v2669_v2  ;;  %2486 = vset.pattern.permute.xlu0 %v2669_v2 }
 0x3f5   : > { %v1083_v58 = vsel %vm748_vm3, %v1079_v56, 0.0  ;;  %v1110_v5 = vsel %vm748_vm3, %v1106_v4, 0.0 }
 0x3f6   : > { %1084 = vadd.xlane.f32.xlu1 %v1083_v58 }
 0x3fa   : > { %1108 = vadd.xlane.f32.xlu1 %v1107_v63 }
 0x3fe   : > { %1050 = vadd.xlane.f32.xlu1 %v1049_v3 }
 0x402   : > { %1111 = vadd.xlane.f32.xlu1 %v1110_v5 }
 0x47f   : > { %v1082_v6 = vpop.xlane.xlu1 %1081 }
 0x480   : > { %v1054_v8 = vpop.xlane.xlu0 %1053  ;;  %v1086_v12 = vmul.f32 0.17677669, %v1082_v6 }
 0x481   : > { %v1056_v18 = vmul.f32 0.17677669, %v1054_v8 }
 0x482   : > { %v1090_v23 = vadd.f32 9.999995e-07, %v1086_v12  ;;  %v2672_v12 = vmov 2  }
 0x483   : > { %v1085_v7 = vpop.xlane.xlu1 %1084  ;;  %v1060_v32 = vadd.f32 9.999995e-07, %v1056_v18 }
 0x484   : > { %v1087_v13 = vmul.f32 0.17677669, %v1085_v7  ;;  %v1095_v38 = vsel %vm1092_vm9, %v1090_v23, 0.0 }
 0x485   : > { %v1065_v44 = vsel %vm1061_vm10, %v1060_v32, 0.0 }
 0x486   : > { %v1091_v29 = vadd.f32 9.999995e-07, %v1087_v13 }
 0x487   : > { %v1109_v9 = vpop.xlane.xlu1 %1108 }
 0x488   : > { %v1113_v19 = vmul.f32 0.17677669, %v1109_v9  ;;  %v1096_v40 = vsel %vm1092_vm9, %v1091_v29, 0.0  ;;  %v2670_v9 = vmov 0  }
 0x489   : > { %v1098_v47 = vadd.f32 %v1096_v40, %v1065_v44 }
 0x48a   : > { %v1117_v33 = vadd.f32 9.999995e-07, %v1113_v19 }
 0x48b   : > { %v1051_v22 = vpop.xlane.xlu1 %1050 }
 0x48c   : > { %v1055_v31 = vmul.f32 0.17677669, %v1051_v22  ;;  %v1122_v45 = vsel %vm1119_vm11, %v1117_v33, 0.0 }
 0x48e   : > { %v1059_v34 = vadd.f32 %v1057_v21, %v1055_v31 }
 0x48f   : > { %v1112_v35 = vpop.xlane.xlu1 %1111 }
 0x490   : > { %v1064_v41 = vsel %vm1061_vm10, %v1059_v34, 0.0  ;;  %v1114_v42 = vmul.f32 0.17677669, %v1112_v35 }
 0x491   : > { %v1097_v43 = vadd.f32 %v1095_v38, %v1064_v41 }
 0x492   : > { %v1118_v46 = vadd.f32 %v1116_v14, %v1114_v42 }
 0x493   : > { %v1124_v48 = vadd.f32 %v1122_v45, %v1097_v43  ;;  %v868_v43 = vmul.f32 %v2990_v57, %v2954_v24 }
 0x494   : > { %v1123_v49 = vsel %vm1119_vm11, %v1118_v46, 0.0 }
 0x495   : > { %v1127_v50 = vsel %vm1126_vm12, %v1124_v48, -inf  ;;  %v1125_v51 = vadd.f32 %v1123_v49, %v1098_v47 }
 0x496   : > { %1128 = vmax.xlane.f32.xlu1 %v1127_v50 }
 0x497   : > { %v1130_v52 = vsel %vm1126_vm12, %v1125_v51, -inf }
 0x498   : > { %1131 = vmax.xlane.f32.xlu0 %v1130_v52 }
 0x523   : > { %v1129_v53 = vpop.xlane.xlu1 %1128 }
 0x524   : > { %v1133_v54 = vsub.f32 %v1124_v48, %v1129_v53 }
 0x525   : > { %v1132_v55 = vpop.xlane.xlu0 %1131 }
 0x526   : > { %v1135_v56 = vmul.f32 1.442695, %v1133_v54  ;;  %v1134_v58 = vsub.f32 %v1125_v51, %v1132_v55 }
 0x528   : > { %2522 = vpow2.f32 %v1135_v56  ;;  %v1137_v59 = vmul.f32 1.442695, %v1134_v58  ;;  %v2248_v56 = vld [vmem:[#allocation2] ss:$0 sm:$0xff] }
 0x52a   : > { %2524 = vpow2.f32 %v1137_v59 }
 0x532   : > { %v2523_v60 = vpop.eup %2522 }
 0x533   : > { %v1139_v62 = vsel %vm1126_vm12, %v2523_v60, 0.0 }
 0x534   : > { %v2525_v63 = vpop.eup %2524  ;;  %1140 = vadd.xlane.f32.xlu1 %v1139_v62 }
 0x535   : > { %v1142_v1 = vsel %vm1126_vm12, %v2525_v63, 0.0 }
 0x536   : > { %1143 = vadd.xlane.f32.xlu0 %v1142_v1 }
 0x5c1   : > { %v1141_v3 = vpop.xlane.xlu1 %1140 }
 0x5c2   : > { %2526 = vrcp.f32 %v1141_v3 }
 0x5c3   : > { %v1144_v4 = vpop.xlane.xlu0 %1143 }
 0x5c4   : > { %2528 = vrcp.f32 %v1144_v4 }
 0x5cc   : > { %v2527_v5 = vpop.eup %2526 }
 0x5cd   : > { %v1147_v6 = vmul.f32 %v2527_v5, %v2523_v60 }
 0x5ce   : > { %v2529_v7 = vpop.eup %2528 }
 0x5cf   : > { %1180 = vperm.xlu1 %2485, %v1147_v6   ;;  %v1148_v8 = vmul.f32 %v2529_v7, %v2525_v63 }
 0x5d1   : > { %1184 = vperm.xlu0 %2486, %v1148_v8  }
 0x5d3   : > { %2487 = vset.pattern.permute.xlu1 %v2670_v9 }
 0x5d4   : > { %1170 = vperm.xlu1 %2487, %v1148_v8  }
 0x5d5   : > { %876 = vrot.lane.b32.xlu0 %v2945_v11, %s2667_s21 }
 0x5d8   : > { %1151 = vrot.lane.b32.xlu1 %v2960_v28, %s2671_s15 }
 0x5d9   : > { %2488 = vset.pattern.permute.xlu1 %v2672_v12 }
 0x5dc   : > { %1153 = vrot.lane.b32.xlu1 %v2962_v30, %s2671_s15 }
 0x5e0   : > { %1210 = vperm.xlu1 %2488, %v1148_v8  }
 0x5e4   : > { %886 = vrot.lane.b32.xlu1 %v2945_v11, %s2671_s15 }
 0x5e5   : > { %2489 = vset.pattern.permute.xlu1 %v2670_v9 }
 0x5e8   : > { %888 = vrot.lane.b32.xlu1 %v2947_v17, %s2671_s15 }
 0x5ec   : > { %1165 = vperm.xlu1 %2489, %v1147_v6  }
 0x5f0   : > { %2490 = vset.pattern.permute.xlu1 %v2672_v12 }
 0x5f1   : > { %1206 = vperm.xlu1 %2490, %v1147_v6  }
 0x5f5   : > { %878 = vrot.lane.b32.xlu1 %v2947_v17, %s2667_s21 }
 0x5f6   : > { %2491 = vset.pattern.permute.xlu1 %v2669_v2 }
 0x64e   : > { %v1181_v13 = vpop.permute.xlu1 %1180 }
 0x64f   : > { %v1187_v18 = vmul.f32 %v1181_v13, %v2960_v28 }
 0x650   : > { %v1185_v19 = vpop.permute.xlu0 %1184 }
 0x651   : > { %v1188_v21 = vmul.f32 %v1185_v19, %v2962_v30  ;;  %1191 = vrot.lane.b32.xlu0 %v1187_v18, %s2671_s15 }
 0x653   : > { %1193 = vrot.lane.b32.xlu1 %v1188_v21, %s2671_s15  ;;  %v1171_v11 = vpop.permute.xlu1 %1170 }
 0x654   : > { %v877_v28 = vpop.permute.xlu0 %876 }
 0x655   : > { %v882_v47 = vadd.f32 %v877_v28, %v868_v43 }
 0x657   : > { %v1152_v22 = vpop.permute.xlu1 %1151 }
 0x658   : > { %v1157_v14 = vrot.slane %v1152_v22, 7  ;;  %v1199_v40 = vrot.slane %v1152_v22, 1 }
 0x65b   : > { %v1154_v23 = vpop.permute.xlu1 %1153 }
 0x65c   : > { %v1158_v17 = vrot.slane %v1154_v23, 7  ;;  %v1200_v35 = vrot.slane %v1154_v23, 1 }
 0x65e   : > { %v1160_v30 = vsel %vm865_vm5, %v1158_v17, %v1157_v14  ;;  %v1202_v44 = vsel %vm894_vm6, %v1200_v35, %v1199_v40  ;;  %v1159_v50 = vsel %vm865_vm5, %v1157_v14, %v1158_v17  ;;  %v1201_v54 = vsel %vm894_vm6, %v1199_v40, %v1200_v35 }
 0x65f   : > { %v1211_v29 = vpop.permute.xlu1 %1210  ;;  %v1161_v48 = vmul.f32 %v2990_v57, %v1160_v30  ;;  %v1204_v51 = vmul.f32 %v2996_v61, %v1202_v44  ;;  %v1174_v57 = vmul.f32 %v1171_v11, %v1159_v50  ;;  %v2255_v30 = vld [vmem:[%s3317_s3 + $0x2] ss:$0 sm:$0xff]  ;;  %v2503_v50 = vld [vmem:[%s3324_s10 + $0x10] sm:$0xff]  }
 0x660   : > { %2389 = vmatpush3.bf16.msra.mxu1 %v2503_v50 }
 0x661   : > { %2390 = vmatprep.subr.bf16.mxu1 %v2665_v0 }
 0x663   : > { %v887_v31 = vpop.permute.xlu1 %886 }
 0x664   : > { %v892_v41 = vrot.slane %v887_v31, 1 }
 0x667   : > { %v889_v32 = vpop.permute.xlu1 %888 }
 0x668   : > { %v893_v38 = vrot.slane %v889_v32, 1  ;;  %v2501_v32 = vld [vmem:[%s3324_s10] sm:$0xff]  }
 0x669   : > { %2381 = vmatpush3.bf16.msra.mxu0 %v2501_v32 }
 0x66a   : > { %v895_v45 = vsel %vm894_vm6, %v892_v41, %v893_v38  ;;  %v896_v46 = vsel %vm894_vm6, %v893_v38, %v892_v41  ;;  %2382 = vmatprep.subr.bf16.mxu0 %v2665_v0 }
 0x66b   : > { %v1166_v33 = vpop.permute.xlu1 %1165  ;;  %v899_v24 = vadd.f32 %v895_v45, %v882_v47  ;;  %v898_v53 = vmul.f32 %v2996_v61, %v896_v46  ;;  %v2256_v45 = vld [vmem:[%s3318_s4 + $0x2] ss:$0 sm:$0xff] }
 0x66c   : > { %v1173_v52 = vmul.f32 %v1166_v33, %v1161_v48  ;;  %v2502_v33 = vld [vmem:[%s3324_s10 + $0x8] sm:$0xff]  }
 0x66d   : > { %v908_v2 = vadd.f32 %v2248_v56, %v899_v24  ;;  %2383 = vmatpush3.bf16.msra.mxu0 %v2502_v33  ;;  %v2257_v24 = vld [vmem:[%s3344_s19] ss:$0 sm:$0xff] }
 0x66e   : > { %2396 = vmatprep.subr.bf16.mxu0 %v2665_v0 }
 0x670   : > { %v1207_v34 = vpop.permute.xlu1 %1206 }
 0x671   : > { %v1213_v58 = vmul.f32 %v1207_v34, %v1201_v54 }
 0x674   : > { %v879_v42 = vpop.permute.xlu1 %878 }
 0x675   : > { %v883_v49 = vadd.f32 %v879_v42, %v2958_v25  ;;  %v1214_v25 = vmul.f32 %v1211_v29, %v1204_v51  ;;  %v2504_v51 = vld [vmem:[%s3324_s10 + $0x18] sm:$0xff]  }
 0x676   : > { %2391 = vmatpush3.bf16.msra.mxu1 %v2504_v51 }
 0x677   : > { %v900_v59 = vadd.f32 %v898_v53, %v883_v49  ;;  %2404 = vmatprep.subr.bf16.mxu1 %v2665_v0 }
 0x679   : > { %v909_v5 = vadd.f32 %v2248_v56, %v900_v59 }
 0x6c3   : > { %v1192_v55 = vpop.permute.xlu0 %1191 }
 0x6c4   : > { %v1197_v60 = vadd.f32 %v1192_v55, %v1173_v52 }
 0x6c5   : > { %v1194_v62 = vpop.permute.xlu1 %1193 }
 0x6c6   : > { %v1215_v63 = vadd.f32 %v1213_v58, %v1197_v60  ;;  %v1198_v1 = vadd.f32 %v1194_v62, %v1174_v57 }
 0x6c8   : > { %v1216_v3 = vadd.f32 %v1214_v25, %v1198_v1  ;;  %v1217_v4 = vadd.f32 %v1215_v63, %v908_v2 }
 0x6ca   : > { %v1221_v6 = vsel %vm748_vm3, %v1217_v4, 0.0  ;;  %v1218_v61 = vadd.f32 %v1216_v3, %v909_v5 }
 0x6cb   : > { %1222 = vadd.xlane.f32.xlu0 %v1221_v6  ;;  %v2265_v6 = vld [vmem:[%s3344_s19 + $0x1] ss:$0 sm:$0xff] }
 0x6cc   : > { %v1224_v7 = vsel %vm748_vm3, %v1218_v61, 0.0 }
 0x6cd   : > { %1225 = vadd.xlane.f32.xlu1 %v1224_v7 }
 0x758   : > { %v1223_v8 = vpop.xlane.xlu0 %1222 }
 0x759   : > { %v1227_v13 = vmul.f32 0.03125, %v1223_v8 }
 0x75a   : > { %v1226_v18 = vpop.xlane.xlu1 %1225 }
 0x75b   : > { %v1229_v19 = vsub.f32 %v1217_v4, %v1227_v13  ;;  %v1228_v21 = vmul.f32 0.03125, %v1226_v18 }
 0x75d   : > { %v1230_v11 = vsub.f32 %v1218_v61, %v1228_v21  ;;  %v1231_v22 = vmul.f32 %v1229_v19, %v1229_v19 }
 0x75f   : > { %v1233_v23 = vsel %vm748_vm3, %v1231_v22, 0.0  ;;  %v1232_v29 = vmul.f32 %v1230_v11, %v1230_v11 }
 0x760   : > { %1234 = vadd.xlane.f32.xlu0 %v1233_v23 }
 0x761   : > { %v1236_v31 = vsel %vm748_vm3, %v1232_v29, 0.0 }
 0x764   : > { %1237 = vadd.xlane.f32.xlu0 %v1236_v31 }
 0x7ed   : > { %v1235_v34 = vpop.xlane.xlu0 %1234 }
 0x7ee   : > { %v1239_v17 = vmul.f32 0.03125, %v1235_v34 }
 0x7f0   : > { %v1241_v14 = vadd.f32 1e-05, %v1239_v17 }
 0x7f1   : > { %v1238_v35 = vpop.xlane.xlu0 %1237 }
 0x7f2   : > { %2530 = vrsqrt.f32 %v1241_v14  ;;  %v1240_v38 = vmul.f32 0.03125, %v1238_v35 }
 0x7f4   : > { %v1242_v28 = vadd.f32 1e-05, %v1240_v38  ;;  %v2505_v38 = vld [vmem:[%s3319_s5 + $0x10] sm:$0xff]  }
 0x7f6   : > { %2532 = vrsqrt.f32 %v1242_v28  ;;  %v2506_v28 = vld [vmem:[#allocation4 + $0x10] sm:$0xff]  }
 0x7fc   : > { %v2531_v40 = vpop.eup %2530 }
 0x7fd   : > { %v1245_v41 = vmul.f32 %v2531_v40, %v1229_v19  ;;  %v2507_v40 = vld [vmem:[%s3319_s5 + $0x18] sm:$0xff]  }
 0x7ff   : > { %v1251_v43 = vmul.f32 %v2255_v30, %v1245_v41  ;;  %v2508_v41 = vld [vmem:[#allocation4 + $0x18] sm:$0xff]  }
 0x800   : > { %v2533_v42 = vpop.eup %2532 }
 0x801   : > { %v1246_v44 = vmul.f32 %v2533_v42, %v1230_v11  ;;  %v1257_v47 = vadd.f32 %v2256_v45, %v1251_v43 }
 0x803   : > { %v1252_v46 = vmul.f32 %v2255_v30, %v1246_v44 }
 0x805   : > { %v1258_v48 = vadd.f32 %v2256_v45, %v1252_v46 }
 0x807   : > { %v1259_v49 = vpack.c.bf16 %v1258_v48, %v1257_v47  ;;  %v2273_v48 = vld [vmem:[%s3317_s3 + $0x4] ss:$0 sm:$0xff] }
 0x809   : > { %2385 = vmatmul.mubr.msk.bf16.vlgmr.msra.gmra.mrb[8].mxu0 %vm748_vm3, %v1259_v49  ;;  %v2277_v49 = vld [vmem:[%s3317_s3 + $0x5] ss:$0 sm:$0xff] }
 0x80a   : > { %2400 = vmatprep.mubr.msk.bf16.mxu0 %vm2666_vm0, %v2665_v0  ;;  %2397 = vmatpush3.bf16.msra.mxu0 %v2505_v38 }
 0x80b   : > { %2398 = vmatprep.subr.bf16.mxu0 %v2665_v0 }
 0x80e   : > { %2399 = vmatpush3.bf16.msra.mxu0 %v2507_v40 }
 0x80f   : > { %2412 = vmatprep.subr.bf16.mxu0 %v2665_v0 }
 0x8dc   : > { %v1318_v52 = vpop.f32.mrb[8].mxu0 }
 0x8dd   : > { %v1319_v53 = vadd.f32 %v2257_v24, %v1318_v52  ;;  %v2386_v54 = vpop.f32.mrb[9].mxu0 }
 0x8de   : > { %v1321_v55 = vpop.f32.mrb[10].mxu0  ;;  %v2274_v54 = vld [vmem:[%s3318_s4 + $0x4] ss:$0 sm:$0xff] }
 0x8df   : > { %v1327_v56 = vmul.f32 0.70710677, %v1319_v53  ;;  %v1322_v58 = vadd.f32 %v2257_v24, %v1321_v55  ;;  %v2387_v59 = vpop.f32.mrb[11].mxu0  ;;  %v1325_v63 = vmul.f32 0.5, %v1319_v53  ;;  %v2278_v55 = vld [vmem:[%s3318_s4 + $0x5] ss:$0 sm:$0xff] }
 0x8e1   : > { %2534 = verf.f32 %v1327_v56  ;;  %v1328_v60 = vmul.f32 0.70710677, %v1322_v58  ;;  %v1326_v1 = vmul.f32 0.5, %v1322_v58 }
 0x8e3   : > { %2536 = verf.f32 %v1328_v60 }
 0x8eb   : > { %v2535_v57 = vpop.eup %2534 }
 0x8ec   : > { %v1331_v62 = vadd.f32 1.0, %v2535_v57 }
 0x8ed   : > { %v2537_v25 = vpop.eup %2536 }
 0x8ee   : > { %v1332_v2 = vadd.f32 1.0, %v2537_v25  ;;  %v1333_v3 = vmul.f32 %v1331_v62, %v1325_v63  ;;  %v2509_v25 = vld [vmem:[%s3323_s9 + $0x8] sm:$0xff]  }
 0x8f0   : > { %v1334_v4 = vmul.f32 %v1332_v2, %v1326_v1 }
 0x8f2   : > { %v1335_v5 = vpack.c.bf16 %v1334_v4, %v1333_v3 }
 0x8f4   : > { %2393 = vmatmul.mubr.msk.bf16.vlgmr.msra.gmra.mrb[8].mxu1 %vm748_vm3, %v1335_v5 }
 0x8f5   : > { %2408 = vmatprep.mubr.msk.bf16.mxu1 %vm2666_vm0, %v2665_v0  ;;  %2405 = vmatpush3.bf16.msra.mxu1 %v2506_v28 }
 0x8f6   : > { %2406 = vmatprep.subr.bf16.mxu1 %v2665_v0 }
 0x8f9   : > { %2407 = vmatpush3.bf16.msra.mxu1 %v2508_v41 }
 0x8fa   : > { %2418 = vmatprep.subr.bf16.mxu1 %v2665_v0 }
 0x9c7   : > { %v1395_v61 = vpop.f32.mrb[8].mxu1 }
 0x9c8   : > { %v1396_v7 = vadd.f32 %v2265_v6, %v1395_v61  ;;  %v2394_v8 = vpop.f32.mrb[9].mxu1 }
 0x9c9   : > { %v1398_v13 = vpop.f32.mrb[10].mxu1 }
 0x9ca   : > { %v3107_v18 = vadd.f32 %v1396_v7, %v2891_v26  ;;  %v1399_v19 = vadd.f32 %v2265_v6, %v1398_v13  ;;  %v2395_v21 = vpop.f32.mrb[11].mxu1 }
 0x9cc   : > { %v3110_v11 = vadd.f32 %v1399_v19, %v2893_v27  ;;  %v1432_v22 = vsel %vm748_vm3, %v3107_v18, 0.0 }
 0x9cd   : > { %1433 = vadd.xlane.f32.xlu1 %v1432_v22 }
 0x9ce   : > { %v1435_v23 = vsel %vm748_vm3, %v3110_v11, 0.0 }
 0x9cf   : > { %1436 = vadd.xlane.f32.xlu0 %v1435_v23 }
 0xa5a   : > { %v1434_v29 = vpop.xlane.xlu1 %1433 }
 0xa5b   : > { %v1438_v31 = vmul.f32 0.03125, %v1434_v29 }
 0xa5c   : > { %v1437_v32 = vpop.xlane.xlu0 %1436 }
 0xa5d   : > { %v1440_v33 = vsub.f32 %v3107_v18, %v1438_v31  ;;  %v1439_v26 = vmul.f32 0.03125, %v1437_v32 }
 0xa5f   : > { %v1441_v34 = vsub.f32 %v3110_v11, %v1439_v26  ;;  %v1442_v17 = vmul.f32 %v1440_v33, %v1440_v33 }
 0xa61   : > { %v1444_v27 = vsel %vm748_vm3, %v1442_v17, 0.0  ;;  %v1443_v14 = vmul.f32 %v1441_v34, %v1441_v34 }
 0xa62   : > { %1445 = vadd.xlane.f32.xlu1 %v1444_v27  ;;  %v1404_v27 = vadd.s32 4294967294, %v690_v37 }
 0xa63   : > { %v1447_v35 = vsel %vm748_vm3, %v1443_v14, 0.0 }
 0xa64   : > { %1448 = vadd.xlane.f32.xlu0 %v1447_v35  ;;  %v1413_v35 = vadd.s32 2, %v697_v39  ;;  %vm1406_vm15 = vcmp.ge.s32.totalorder %v1404_v27, 0 }
 0xaef   : > { %v1446_v30 = vpop.xlane.xlu1 %1445 }
 0xaf0   : > { %v1450_v42 = vmul.f32 0.03125, %v1446_v30 }
 0xaf1   : > { %v1449_v43 = vpop.xlane.xlu0 %1448 }
 0xaf2   : > { %v1452_v44 = vadd.f32 1e-05, %v1450_v42  ;;  %v1451_v45 = vmul.f32 0.03125, %v1449_v43 }
 0xaf4   : > { %2538 = vrsqrt.f32 %v1452_v44  ;;  %v1453_v46 = vadd.f32 1e-05, %v1451_v45  ;;  %v3194_v45 = vsel %vm1406_vm15, 1.0, %v2665_v0 }
 0xaf6   : > { %2540 = vrsqrt.f32 %v1453_v46 }
 0xafe   : > { %v2539_v47 = vpop.eup %2538 }
 0xaff   : > { %v1456_v50 = vmul.f32 %v2539_v47, %v1440_v33 }
 0xb00   : > { %v2541_v51 = vpop.eup %2540 }
 0xb01   : > { %v1462_v24 = vmul.f32 %v2273_v48, %v1456_v50  ;;  %v1476_v52 = vmul.f32 %v2277_v49, %v1456_v50  ;;  %v1457_v53 = vmul.f32 %v2541_v51, %v1441_v34 }
 0xb03   : > { %v1463_v56 = vmul.f32 %v2273_v48, %v1457_v53  ;;  %v1477_v58 = vmul.f32 %v2277_v49, %v1457_v53  ;;  %v1468_v59 = vadd.f32 %v2274_v54, %v1462_v24  ;;  %v1482_v57 = vadd.f32 %v2278_v55, %v1476_v52 }
 0xb05   : > { %v1469_v60 = vadd.f32 %v2274_v54, %v1463_v56  ;;  %v1483_v62 = vadd.f32 %v2278_v55, %v1477_v58 }
 0xb07   : > { %v1484_v63 = vpack.c.bf16 %v1469_v60, %v1468_v59  ;;  %v1594_v1 = vpack.c.bf16 %v1483_v62, %v1482_v57 }
 0xb09   : > { %2401 = vmatmul.mubr.msk.bf16.vlgmr.msra.gmra.mrb[12].mxu0 %vm748_vm3, %v1484_v63  ;;  %2409 = vmatmul.mubr.msk.bf16.vlgmr.msra.gmra.mrb[12].mxu1 %vm748_vm3, %v1594_v1 }
 0xb0a   : > { %2413 = vmatpush3.bf16.msra.mxu0 %v2509_v25  ;;  %2414 = vmatprep.mubr.msk.bf16.mxu0 %vm2666_vm0, %v2665_v0 }
 0xb0b   : > { %2422 = vmatprep.mubr.msk.bf16.mxu1 %vm2666_vm0, %v2665_v0  ;;  %2426 = vmatprep.subr.bf16.mxu0 %v2665_v0 }
 0xb11   : > { %2415 = vmatmul.mubr.msk.bf16.vlgmr.msra.gmra.mrb[16].mxu0 %vm986_vm4, %v2939_v10  ;;  %v2287_v10 = vld [vmem:[#allocation6 + $0x1] ss:$0 sm:$0xff] }
 0xb12   : > { %2430 = vmatprep.mubr.msk.bf16.mxu0 %vm2666_vm0, %v2665_v0  ;;  %vm1417_vm0 = vcmp.lt.s32.totalorder %v1413_v35, 16 }
 0xb13   : > { %v3201_v51 = vsel %vm1417_vm0, 1.0, %v2665_v0 }
 0xbdc   : > { %v3156_v2 = vpop.f32.mrb[12].mxu0  ;;  %v1657_v3 = vpop.f32.mrb[12].mxu1 }
 0xbdd   : > { %v2402_v4 = vpop.f32.mrb[13].mxu0  ;;  %v2410_v5 = vpop.f32.mrb[13].mxu1  ;;  %v1546_v7 = vrot.slane %v3156_v2, 6  ;;  %v3171_v23 = vadd.f32 %v2287_v10, %v1657_v3 }
 0xbde   : > { %v3158_v6 = vpop.f32.mrb[14].mxu0  ;;  %v1660_v61 = vpop.f32.mrb[14].mxu1 }
 0xbdf   : > { %v1547_v8 = vrot.slane %v3158_v6, 6  ;;  %v2403_v13 = vpop.f32.mrb[15].mxu0  ;;  %v2411_v19 = vpop.f32.mrb[15].mxu1  ;;  %v3173_v31 = vadd.f32 %v2287_v10, %v1660_v61  ;;  %v1740_v61 = vsel %vm1406_vm15, 9.999995e-07, %v2668_v20 }
 0xbe1   : > { %v3165_v21 = vsel %vm1548_vm13, %v1546_v7, %v1547_v8  ;;  %v3169_v22 = vsel %vm1548_vm13, %v1547_v8, %v1546_v7 }
 0xbe4   : > { %v1707_v29 = vpop.f32.mrb[16].mxu0 }
 0xbe5   : > { %v1714_v32 = vadd.f32 %v1707_v29, %v3171_v23  ;;  %v2416_v33 = vpop.f32.mrb[17].mxu0 }
 0xbe6   : > { %v1710_v26 = vpop.f32.mrb[18].mxu0  ;;  %v1791_v33 = vsel %vm1417_vm0, 9.999995e-07, %v2668_v20 }
 0xbe7   : > { %v1715_v34 = vadd.f32 %v1710_v26, %v3173_v31  ;;  %v2417_v17 = vpop.f32.mrb[19].mxu0  ;;  %1718 = vrot.lane.b32.xlu1 %v1714_v32, %s2667_s21 }
 0xbe9   : > { %1720 = vrot.lane.b32.xlu0 %v1715_v34, %s2667_s21 }
 0xbeb   : > { %1752 = vrot.lane.b32.xlu1 %v1714_v32, %s2667_s21 }
 0xbef   : > { %1754 = vrot.lane.b32.xlu1 %v1715_v34, %s2667_s21 }
 0xc59   : > { %v1719_v14 = vpop.permute.xlu1 %1718 }
 0xc5a   : > { %v1724_v28 = vrot.slane %v1719_v14, 6  ;;  %v1774_v40 = vrot.slane %v1719_v14, 2 }
 0xc5b   : > { %v1721_v38 = vpop.permute.xlu0 %1720 }
 0xc5c   : > { %v1725_v41 = vrot.slane %v1721_v38, 6  ;;  %v1775_v30 = vrot.slane %v1721_v38, 2 }
 0xc5d   : > { %v1753_v42 = vpop.permute.xlu1 %1752 }
 0xc5e   : > { %v1758_v43 = vmul.f32 %v1753_v42, %v1714_v32  ;;  %v1726_v44 = vsel %vm1548_vm13, %v1724_v28, %v1725_v41  ;;  %v1776_v37 = vsel %vm1577_vm14, %v1774_v40, %v1775_v30  ;;  %v1727_v36 = vsel %vm1548_vm13, %v1725_v41, %v1724_v28 }
 0xc5f   : > { %v1731_v39 = vmul.f32 %v1726_v44, %v1715_v34  ;;  %v1728_v47 = vmul.f32 %v3194_v45, %v1727_v36  ;;  %v1780_v50 = vmul.f32 %v1776_v37, %v1714_v32  ;;  %v1777_v24 = vsel %vm1577_vm14, %v1775_v30, %v1774_v40 }
 0xc60   : > { %v1760_v46 = vsel %vm748_vm3, %v1758_v43, 0.0  ;;  %v1779_v55 = vmul.f32 %v3201_v51, %v1777_v24 }
 0xc61   : > { %v1755_v48 = vpop.permute.xlu1 %1754  ;;  %1761 = vadd.xlane.f32.xlu0 %v1760_v46  ;;  %v1735_v49 = vsel %vm748_vm3, %v1731_v39, 0.0  ;;  %v1730_v54 = vmul.f32 %v1728_v47, %v1714_v32  ;;  %v1782_v56 = vsel %vm748_vm3, %v1780_v50, 0.0 }
 0xc62   : > { %v1759_v52 = vmul.f32 %v1755_v48, %v1715_v34  ;;  %1736 = vadd.xlane.f32.xlu1 %v1735_v49  ;;  %v1781_v59 = vmul.f32 %v1779_v55, %v1715_v34 }
 0xc63   : > { %v1732_v58 = vsel %vm748_vm3, %v1730_v54, 0.0 }
 0xc64   : > { %v1763_v53 = vsel %vm748_vm3, %v1759_v52, 0.0  ;;  %v1785_v60 = vsel %vm748_vm3, %v1781_v59, 0.0 }
 0xc65   : > { %1764 = vadd.xlane.f32.xlu0 %v1763_v53 }
 0xc66   : > { %1783 = vadd.xlane.f32.xlu1 %v1782_v56 }
 0xc69   : > { %1733 = vadd.xlane.f32.xlu0 %v1732_v58 }
 0xc6d   : > { %1786 = vadd.xlane.f32.xlu0 %v1785_v60 }
 0xcee   : > { %v1762_v57 = vpop.xlane.xlu0 %1761 }
 0xcef   : > { %v1737_v62 = vpop.xlane.xlu1 %1736  ;;  %v1766_v63 = vmul.f32 0.17677669, %v1762_v57 }
 0xcf0   : > { %v1739_v4 = vmul.f32 0.17677669, %v1737_v62 }
 0xcf1   : > { %v1768_v8 = vadd.f32 9.999995e-07, %v1766_v63 }
 0xcf2   : > { %v1765_v25 = vpop.xlane.xlu0 %1764  ;;  %v1743_v10 = vadd.f32 9.999995e-07, %v1739_v4 }
 0xcf3   : > { %v1767_v1 = vmul.f32 0.17677669, %v1765_v25  ;;  %v1784_v3 = vpop.xlane.xlu1 %1783  ;;  %v1770_v34 = vsel %vm1092_vm9, %v1768_v8, 0.0 }
 0xcf4   : > { %v1788_v5 = vmul.f32 0.17677669, %v1784_v3  ;;  %v1745_v28 = vsel %vm1061_vm10, %v1743_v10, 0.0 }
 0xcf5   : > { %v1769_v13 = vadd.f32 9.999995e-07, %v1767_v1 }
 0xcf6   : > { %v1734_v7 = vpop.xlane.xlu0 %1733  ;;  %v1792_v29 = vadd.f32 9.999995e-07, %v1788_v5 }
 0xcf7   : > { %v1738_v19 = vmul.f32 0.17677669, %v1734_v7  ;;  %v1771_v17 = vsel %vm1092_vm9, %v1769_v13, 0.0 }
 0xcf8   : > { %v1794_v40 = vsel %vm1119_vm11, %v1792_v29, 0.0  ;;  %v1773_v20 = vadd.f32 %v1771_v17, %v1745_v28 }
 0xcf9   : > { %v1742_v32 = vadd.f32 %v1740_v61, %v1738_v19 }
 0xcfa   : > { %v1787_v26 = vpop.xlane.xlu0 %1786 }
 0xcfb   : > { %v1744_v27 = vsel %vm1061_vm10, %v1742_v32, 0.0  ;;  %v1789_v14 = vmul.f32 0.17677669, %v1787_v26 }
 0xcfc   : > { %v1772_v38 = vadd.f32 %v1770_v34, %v1744_v27 }
 0xcfd   : > { %v1793_v35 = vadd.f32 %v1791_v33, %v1789_v14 }
 0xcfe   : > { %v1796_v41 = vadd.f32 %v1794_v40, %v1772_v38 }
 0xcff   : > { %v1795_v30 = vsel %vm1119_vm11, %v1793_v35, 0.0 }
 0xd00   : > { %v1798_v42 = vsel %vm1126_vm12, %v1796_v41, -inf  ;;  %v1797_v43 = vadd.f32 %v1795_v30, %v1773_v20 }
 0xd01   : > { %1799 = vmax.xlane.f32.xlu1 %v1798_v42 }
 0xd02   : > { %v1801_v44 = vsel %vm1126_vm12, %v1797_v43, -inf }
 0xd03   : > { %1802 = vmax.xlane.f32.xlu0 %v1801_v44 }
 0xd8e   : > { %v1800_v37 = vpop.xlane.xlu1 %1799 }
 0xd8f   : > { %v1804_v36 = vsub.f32 %v1796_v41, %v1800_v37 }
 0xd90   : > { %v1803_v39 = vpop.xlane.xlu0 %1802 }
 0xd91   : > { %v1806_v46 = vmul.f32 1.442695, %v1804_v36  ;;  %v1805_v47 = vsub.f32 %v1797_v43, %v1803_v39 }
 0xd93   : > { %2542 = vpow2.f32 %v1806_v46  ;;  %v1808_v48 = vmul.f32 1.442695, %v1805_v47 }
 0xd95   : > { %2544 = vpow2.f32 %v1808_v48 }
 0xd9d   : > { %v2543_v49 = vpop.eup %2542 }
 0xd9e   : > { %v1810_v50 = vsel %vm1126_vm12, %v2543_v49, 0.0 }
 0xd9f   : > { %v2545_v16 = vpop.eup %2544  ;;  %1811 = vadd.xlane.f32.xlu1 %v1810_v50 }
 0xda0   : > { %v1813_v24 = vsel %vm1126_vm12, %v2545_v16, 0.0 }
 0xda1   : > { %1814 = vadd.xlane.f32.xlu0 %v1813_v24 }
 0xe2c   : > { %v1812_v52 = vpop.xlane.xlu1 %1811 }
 0xe2d   : > { %2546 = vrcp.f32 %v1812_v52 }
 0xe2e   : > { %v1815_v53 = vpop.xlane.xlu0 %1814 }
 0xe2f   : > { %2548 = vrcp.f32 %v1815_v53 }
 0xe37   : > { %v2547_v54 = vpop.eup %2546 }
 0xe38   : > { %v1818_v55 = vmul.f32 %v2547_v54, %v2543_v49 }
 0xe39   : > { %v2549_v56 = vpop.eup %2548 }
 0xe3a   : > { %1851 = vperm.xlu1 %2491, %v1818_v55   ;;  %v1819_v58 = vmul.f32 %v2549_v56, %v2545_v16 }
 0xe3c   : > { %1855 = vperm.xlu0 %2486, %v1819_v58  }
 0xe3e   : > { %2492 = vset.pattern.permute.xlu1 %v2670_v9 }
 0xe3f   : > { %1841 = vperm.xlu1 %2492, %v1819_v58  }
 0xe40   : > { %1822 = vrot.lane.b32.xlu0 %v3171_v23, %s2671_s15 }
 0xe41   : > { %2495 = vset.pattern.permute.xlu0 %v2672_v12 }
 0xe43   : > { %1824 = vrot.lane.b32.xlu1 %v3173_v31, %s2671_s15 }
 0xe44   : > { %1571 = vrot.lane.b32.xlu0 %v3158_v6, %s2671_s15  ;;  %2493 = vset.pattern.permute.xlu1 %v2672_v12 }
 0xe47   : > { %1881 = vperm.xlu1 %2493, %v1819_v58  }
 0xe48   : > { %1561 = vrot.lane.b32.xlu0 %v3158_v6, %s2667_s21 }
 0xe4b   : > { %2494 = vset.pattern.permute.xlu1 %v2670_v9 }
 0xe4c   : > { %1836 = vperm.xlu1 %2494, %v1818_v55   ;;  %1877 = vperm.xlu0 %2495, %v1818_v55  }
 0xe50   : > { %1569 = vrot.lane.b32.xlu1 %v3156_v2, %s2671_s15 }
 0xe54   : > { %1559 = vrot.lane.b32.xlu1 %v3156_v2, %s2667_s21 }
 0xeb9   : > { %v1852_v59 = vpop.permute.xlu1 %1851 }
 0xeba   : > { %v1858_v60 = vmul.f32 %v1852_v59, %v3171_v23  ;;  %v2510_v59 = vld [vmem:[%s3324_s10 + $0x20] sm:$0xff]  }
 0xebb   : > { %v1856_v57 = vpop.permute.xlu0 %1855  ;;  %2419 = vmatpush3.bf16.msra.mxu1 %v2510_v59 }
 0xebc   : > { %v1859_v12 = vmul.f32 %v1856_v57, %v3173_v31  ;;  %1862 = vrot.lane.b32.xlu1 %v1858_v60, %s2671_s15  ;;  %v1551_v31 = vmul.f32 %v3194_v45, %v3169_v22  ;;  %v2511_v60 = vld [vmem:[%s3324_s10 + $0x28] sm:$0xff]   ;;  %2420 = vmatprep.subr.bf16.mxu1 %v2665_v0 }
 0xebe   : > { %1864 = vrot.lane.b32.xlu0 %v1859_v12, %s2671_s15  ;;  %v1842_v6 = vpop.permute.xlu1 %1841 }
 0xebf   : > { %v1823_v25 = vpop.permute.xlu0 %1822  ;;  %2421 = vmatpush3.bf16.msra.mxu1 %v2511_v60 }
 0xec0   : > { %v1828_v2 = vrot.slane %v1823_v25, 6  ;;  %v1870_v13 = vrot.slane %v1823_v25, 2 }
 0xec2   : > { %v1825_v9 = vpop.permute.xlu1 %1824 }
 0xec3   : > { %v1572_v1 = vpop.permute.xlu0 %1571  ;;  %v1829_v4 = vrot.slane %v1825_v9, 6  ;;  %v1871_v61 = vrot.slane %v1825_v9, 2 }
 0xec4   : > { %v1576_v7 = vrot.slane %v1572_v1, 2  ;;  %v2297_v1 = vld [vmem:[%s3317_s3 + $0x6] ss:$0 sm:$0xff] }
 0xec5   : > { %v1831_v19 = vsel %vm1548_vm13, %v1829_v4, %v1828_v2  ;;  %v1873_v32 = vsel %vm1577_vm14, %v1871_v61, %v1870_v13  ;;  %v1830_v22 = vsel %vm1548_vm13, %v1828_v2, %v1829_v4  ;;  %v1872_v40 = vsel %vm1577_vm14, %v1870_v13, %v1871_v61  ;;  %v2298_v61 = vld [vmem:[%s3318_s4 + $0x6] ss:$0 sm:$0xff]  ;;  %v2512_v13 = vld [vmem:[%s3324_s10 + $0x30] sm:$0xff]  }
 0xec6   : > { %v1882_v62 = vpop.permute.xlu1 %1881  ;;  %v1832_v33 = vmul.f32 %v3194_v45, %v1831_v19  ;;  %v1875_v27 = vmul.f32 %v3201_v51, %v1873_v32  ;;  %v2286_v45 = vld [vmem:[#allocation2 + $0x1] ss:$0 sm:$0xff]  ;;  %v1845_v30 = vmul.f32 %v1842_v6, %v1830_v22  ;;  %2427 = vmatpush3.bf16.msra.mxu0 %v2512_v13  ;;  %v2513_v19 = vld [vmem:[%s3324_s10 + $0x38] sm:$0xff]  }
 0xec7   : > { %v1562_v23 = vpop.permute.xlu0 %1561  ;;  %2428 = vmatprep.subr.bf16.mxu0 %v2665_v0 }
 0xec8   : > { %v1566_v14 = vadd.f32 %v1562_v23, %v3165_v21  ;;  %v1885_v44 = vmul.f32 %v1882_v62, %v1875_v27 }
 0xeca   : > { %2429 = vmatpush3.bf16.msra.mxu0 %v2513_v19 }
 0xecb   : > { %v1837_v63 = vpop.permute.xlu1 %1836  ;;  %v1878_v34 = vpop.permute.xlu0 %1877 }
 0xecc   : > { %v1844_v38 = vmul.f32 %v1837_v63, %v1832_v33  ;;  %v1884_v20 = vmul.f32 %v1878_v34, %v1872_v40 }
 0xecf   : > { %v1570_v3 = vpop.permute.xlu1 %1569 }
 0xed0   : > { %v1575_v5 = vrot.slane %v1570_v3, 2 }
 0xed2   : > { %v1579_v10 = vsel %vm1577_vm14, %v1576_v7, %v1575_v5  ;;  %v1578_v17 = vsel %vm1577_vm14, %v1575_v5, %v1576_v7 }
 0xed3   : > { %v1560_v8 = vpop.permute.xlu1 %1559  ;;  %v1581_v26 = vmul.f32 %v3201_v51, %v1579_v10  ;;  %v2304_v10 = vld [vmem:[%s3344_s19 + $0x2] ss:$0 sm:$0xff] }
 0xed4   : > { %v1565_v29 = vadd.f32 %v1560_v8, %v1551_v31 }
 0xed5   : > { %v1583_v42 = vadd.f32 %v1581_v26, %v1566_v14 }
 0xed6   : > { %v1582_v28 = vadd.f32 %v1578_v17, %v1565_v29 }
 0xed7   : > { %v1593_v47 = vadd.f32 %v2286_v45, %v1583_v42 }
 0xed8   : > { %v1592_v39 = vadd.f32 %v2286_v45, %v1582_v28 }
 0xf2e   : > { %v1863_v35 = vpop.permute.xlu1 %1862 }
 0xf2f   : > { %v1868_v41 = vadd.f32 %v1863_v35, %v1844_v38 }
 0xf30   : > { %v1865_v43 = vpop.permute.xlu0 %1864 }
 0xf31   : > { %v1886_v37 = vadd.f32 %v1884_v20, %v1868_v41  ;;  %v1869_v36 = vadd.f32 %v1865_v43, %v1845_v30  ;;  %v2313_v30 = vld [vmem:[%s3344_s19 + $0x3] ss:$0 sm:$0xff] }
 0xf33   : > { %v1887_v46 = vadd.f32 %v1885_v44, %v1869_v36  ;;  %v1888_v51 = vadd.f32 %v1886_v37, %v1592_v39 }
 0xf35   : > { %v1892_v21 = vsel %vm748_vm3, %v1888_v51, 0.0  ;;  %v1889_v48 = vadd.f32 %v1887_v46, %v1593_v47 }
 0xf36   : > { %1893 = vadd.xlane.f32.xlu1 %v1892_v21 }
 0xf37   : > { %v1895_v15 = vsel %vm748_vm3, %v1889_v48, 0.0 }
 0xf38   : > { %1896 = vadd.xlane.f32.xlu0 %v1895_v15 }
 0xfc3   : > { %v1894_v49 = vpop.xlane.xlu1 %1893 }
 0xfc4   : > { %v1898_v50 = vmul.f32 0.03125, %v1894_v49 }
 0xfc5   : > { %v1897_v16 = vpop.xlane.xlu0 %1896 }
 0xfc6   : > { %v1900_v24 = vsub.f32 %v1888_v51, %v1898_v50  ;;  %v1899_v52 = vmul.f32 0.03125, %v1897_v16 }
 0xfc8   : > { %v1901_v53 = vsub.f32 %v1889_v48, %v1899_v52  ;;  %v1902_v54 = vmul.f32 %v1900_v24, %v1900_v24 }
 0xfca   : > { %v1904_v55 = vsel %vm748_vm3, %v1902_v54, 0.0  ;;  %v1903_v56 = vmul.f32 %v1901_v53, %v1901_v53 }
 0xfcb   : > { %1905 = vadd.xlane.f32.xlu0 %v1904_v55 }
 0xfcc   : > { %v1907_v58 = vsel %vm748_vm3, %v1903_v56, 0.0 }
 0xfcd   : > { %1908 = vadd.xlane.f32.xlu1 %v1907_v58 }
0x1058   : > { %v1906_v57 = vpop.xlane.xlu0 %1905 }
0x1059   : > { %v1910_v12 = vmul.f32 0.03125, %v1906_v57 }
0x105a   : > { %v1909_v6 = vpop.xlane.xlu1 %1908 }
0x105b   : > { %v1912_v9 = vadd.f32 1e-05, %v1910_v12  ;;  %v1911_v62 = vmul.f32 0.03125, %v1909_v6 }
0x105d   : > { %2550 = vrsqrt.f32 %v1912_v9  ;;  %v1913_v25 = vadd.f32 1e-05, %v1911_v62 }
0x105f   : > { %2552 = vrsqrt.f32 %v1913_v25 }
0x1067   : > { %v2551_v63 = vpop.eup %2550 }
0x1068   : > { %v1916_v3 = vmul.f32 %v2551_v63, %v1900_v24 }
0x1069   : > { %v2553_v4 = vpop.eup %2552 }
0x106a   : > { %v1922_v5 = vmul.f32 %v2297_v1, %v1916_v3  ;;  %v1917_v2 = vmul.f32 %v2553_v4, %v1901_v53 }
0x106c   : > { %v1923_v7 = vmul.f32 %v2297_v1, %v1917_v2  ;;  %v1928_v23 = vadd.f32 %v2298_v61, %v1922_v5 }
0x106e   : > { %v1929_v8 = vadd.f32 %v2298_v61, %v1923_v7 }
0x1070   : > { %v1930_v31 = vpack.c.bf16 %v1929_v8, %v1928_v23 }
0x1072   : > { %2423 = vmatmul.mubr.msk.bf16.vlgmr.msra.gmra.mrb[16].mxu1 %vm748_vm3, %v1930_v31 }
0x1145   : > { %v1991_v29 = vpop.f32.mrb[16].mxu1 }
0x1146   : > { %v1992_v32 = vadd.f32 %v2304_v10, %v1991_v29  ;;  %v2424_v33 = vpop.f32.mrb[17].mxu1 }
0x1147   : > { %v1994_v26 = vpop.f32.mrb[18].mxu1 }
0x1148   : > { %v2000_v34 = vmul.f32 0.70710677, %v1992_v32  ;;  %v1995_v17 = vadd.f32 %v2304_v10, %v1994_v26  ;;  %v2425_v22 = vpop.f32.mrb[19].mxu1  ;;  %v1998_v28 = vmul.f32 0.5, %v1992_v32 }
0x114a   : > { %2554 = verf.f32 %v2000_v34  ;;  %v2001_v27 = vmul.f32 0.70710677, %v1995_v17  ;;  %v1999_v40 = vmul.f32 0.5, %v1995_v17 }
0x114c   : > { %2556 = verf.f32 %v2001_v27 }
0x1154   : > { %v2555_v0 = vpop.eup %2554 }
0x1155   : > { %v2004_v14 = vadd.f32 1.0, %v2555_v0 }
0x1156   : > { %v2557_v38 = vpop.eup %2556 }
0x1157   : > { %v2005_v35 = vadd.f32 1.0, %v2557_v38  ;;  %v2006_v45 = vmul.f32 %v2004_v14, %v1998_v28 }
0x1159   : > { %v2007_v20 = vmul.f32 %v2005_v35, %v1999_v40 }
0x115b   : > { %v2008_v41 = vpack.c.bf16 %v2007_v20, %v2006_v45 }
0x115d   : > { %2431 = vmatmul.mubr.msk.bf16.vlgmr.msra.gmra.mrb[20].mxu0 %vm748_vm3, %v2008_v41 }
0x1230   : > { %v2068_v42 = vpop.f32.mrb[20].mxu0 }
0x1231   : > { %v2069_v43 = vadd.f32 %v2313_v30, %v2068_v42  ;;  %v2432_v44 = vpop.f32.mrb[21].mxu0 }
0x1232   : > { %v2071_v37 = vpop.f32.mrb[22].mxu0 }
0x1233   : > { %v2075_v36 = vadd.f32 %v2069_v43, %v3107_v18  ;;  %v2072_v39 = vadd.f32 %v2313_v30, %v2071_v37  ;;  %v2433_v46 = vpop.f32.mrb[23].mxu0 }
0x1235   : > { %2077 = vxpose.xlu0.b32.start [1/2] (short) (narrow) %v2075_v36, 32  ;;  %v2076_v51 = vadd.f32 %v2072_v39, %v3110_v11 }
0x1239   : > { %2078 = vxpose.xlu0.b32.end [2/2] (short) (narrow) %v2076_v51, 32 }
0x12b5   : > { %v2093_v47 = vpop.trf.xlu0 }
0x12b6   : > { %2109 = vst.msk [vmem:[%s545_s11] sm:$0xff] %vm986_vm4, %v2093_v47 }
0x12b9   : > { %v2094_v21 = vpop.trf.xlu0 }
0x12ba   : > { %2110 = vst.msk [vmem:[%s545_s11 + $0x8] sm:$0xff] %vm986_vm4, %v2094_v21 }
0x12bd   : > { %v2095_v48 = vpop.trf.xlu0 }
0x12be   : > { %2111 = vst.msk [vmem:[%s545_s11 + $0x10] sm:$0xff] %vm986_vm4, %v2095_v48 }
0x12c1   : > { %v2096_v18 = vpop.trf.xlu0 }
0x12c2   : > { %2112 = vst.msk [vmem:[%s545_s11 + $0x18] sm:$0xff] %vm986_vm4, %v2096_v18 }
0x12c3 PF: > { %s3346_s23 = sld [smem:[#allocation9_spill]] }
0x12c9   : > { %s26_s29 = sadd.s32 1, %s3346_s23  }
0x12ca   : > { %p23_p5 = scmp.ge.s32.totalorder %s26_s29, 4  }
0x12cc   :  { %25 = sbr.rel (!%p23_p5) target bundleno = 5 (0x5), region = 136 }
0x12d3   :  { %2134 = vsyncpa [#allocation3], 1 }
0x12d4   :  { %2136 = vsyncpa [#allocation3 + $0x1], 1 }
0x12d5   :  { %2137 = vsyncpa [#allocation5], 1 }

</bundles_post_ra>
